<compile_context>
chip_gen: v5e
topology: v5e:2x2
jax: 0.10.0
libtpu: 0.0.40
codegen_flags: <defaults>
</compile_context>

<pallas_src>
import functools

import jax
import jax.numpy as jnp
from jax.experimental import pallas as pl
from jax.experimental.pallas import tpu as pltpu

NEG_SLOPE = 0.01      # F.leaky_relu default negative slope
NEG_MASK = -1e30      # finite "minus infinity" (bf16-representable) for non-edges


def _round_up(x, m):
    return (x + m - 1) // m * m


def _gat_kernel(zext_ref, ssrc_ref, dstsc_ref, adj_ref, zres_ref, out_ref, acc_ref, *,
                num_heads, out_dim, hd_pad, use_residual, compute_dtype):
    """Grid point (i, j): dst tile i  x  src tile j.

    zext_ref : (H, Ts, D+1)  per-head [W_h x_u | 1] src features (compute_dtype)
    ssrc_ref : (H, Ts)       per-head src attention scores (compute_dtype)
    dstsc_ref: (T, 2H)       [s_dst | precomputed softmax stabilizer m], f32
    adj_ref  : (T, Ts)       int8 edge-mask tile
    zres_ref : (T, H*D)      projected dst features (residual), f32
    out_ref  : (T, hd_pad)   concatenated head outputs, lane-dense padded
    acc_ref  : (H, T, D+1)   f32 scratch: per-head [unnormalized out | denom]
    """
    j = pl.program_id(1)
    H, D = num_heads, out_dim
    ew = compute_dtype

    @pl.when(j == 0)
    def _init():
        acc_ref[...] = jnp.zeros_like(acc_ref)

    edge_mask = adj_ref[...] != 0                       # (T, Ts), shared across heads
    sdst = dstsc_ref[:, :H]                             # (T, H) f32
    mrow = dstsc_ref[:, H:]                             # (T, H) f32 stabilizer

    for hd in range(H):                                 # static unroll over heads
        s_d = sdst[:, hd:hd + 1].astype(ew)             # (T, 1)
        m = mrow[:, hd:hd + 1].astype(ew)               # (T, 1)  >= leaky(s_d + s_s)
        s_s = ssrc_ref[hd:hd + 1, :]                    # (1, Ts), already compute_dtype

        e = s_d + s_s                                   # (T, Ts)
        e = jnp.maximum(e, NEG_SLOPE * e)               # leaky_relu (no compare/select)
        e = jnp.where(edge_mask, e - m, NEG_MASK)       # stabilize + mask non-edges once
        p = jnp.exp(e)                                  # masked / padded entries -> 0

        # MXU: [unnormalized aggregation | softmax denominator] in one matmul --
        # the trailing ones column of zext produces the row-sum of p for free.
        acc_ref[hd] = acc_ref[hd] + jnp.dot(
            p, zext_ref[hd], preferred_element_type=jnp.float32)   # (T, D+1) f32

    @pl.when(j == pl.num_programs(1) - 1)
    def _finalize():
        outs = []
        for hd in range(H):
            blk = acc_ref[hd]                           # (T, D+1) f32
            num, den = blk[:, :D], blk[:, D:]
            inv = pl.reciprocal(den, approx=True)       # EUP
            inv = inv * (2.0 - den * inv)               # one Newton step -> ~f32 exact
            o = num * inv
            if use_residual:
                o = o + zres_ref[:, hd * D:(hd + 1) * D]
            outs.append(o)
        pad = hd_pad - H * D
        if pad > 0:                                     # keep the store lane-dense
            outs.append(jnp.zeros((out_ref.shape[0], pad), jnp.float32))
        out_ref[...] = jnp.concatenate(outs, axis=1).astype(out_ref.dtype)


def _footprint_bytes(t_dst, t_src, num_heads, out_dim, hd_pad, cd):
    """Per-step VMEM estimate (double-buffered streams + scratch + temporaries)."""
    dlane = _round_up(out_dim + 1, 128)
    hd_lane = _round_up(num_heads * out_dim, 128)
    return (2 * num_heads * t_src * dlane * cd          # z_ext blocks
            + 2 * _round_up(num_heads, 8) * t_src * cd  # s_src blocks
            + 2 * t_dst * 128 * 4                       # dst scores (lane padded)
            + 2 * t_dst * t_src * 1                     # adj (int8)
            + 2 * t_dst * hd_lane * 4                   # residual z
            + 2 * t_dst * hd_pad * 4                    # out tile
            + num_heads * t_dst * dlane * 4             # accumulator scratch
            + 5 * t_dst * t_src * max(cd, 2))           # e/p/mask temporaries headroom


def multi_head_gat(h, adj, w_t, a_src, a_dst, *, merge='cat', use_residual=False,
                   tile_dst=256, tile_src=512, compute_dtype=jnp.bfloat16,
                   dst_semantics=None):
    """Forward pass of MultiHeadGATLayer (merge='cat' or 'mean').

    h     : (N_src, in_dim)   source-node features
    adj   : (N_dst, N_src)    edge mask (nonzero == edge); DGL-block convention:
                              the first N_dst source nodes ARE the dst nodes.
    w_t   : (in_dim, H*D)     per-head fc.weight.T concatenated on dim 1
    a_src : (H, D)            attn_fc.weight[:, :D]   (src half)
    a_dst : (H, D)            attn_fc.weight[:, D:]   (dst half)
    compute_dtype : bf16 (default; v6e/v7x-native) or f32 (exact / v5e)
    """
    f32 = jnp.float32
    n_src, in_dim = h.shape
    n_dst = adj.shape[0]
    num_heads, out_dim = a_src.shape
    hd_total = num_heads * out_dim
    hd_pad = _round_up(hd_total, 128)           # lane-dense output store
    cd = jnp.dtype(compute_dtype).itemsize

    # ---- generation-aware tile sizing (v7x: 64 MiB VMEM, v5e/v6e: 128 MiB) ----
    try:
        info = pltpu.get_tpu_info()
        vmem_cap = int(getattr(info, "vmem_capacity_bytes", 0)) or (64 << 20)
    except Exception:                           # pragma: no cover
        vmem_cap = 64 << 20                     # v7x-safe fallback (smallest VMEM)
    budget = vmem_cap // 2

    t_dst = _round_up(max(32, min(int(tile_dst), _round_up(n_dst, 32))), 32)
    t_src = _round_up(max(128, min(int(tile_src), _round_up(n_src, 128))), 128)
    # Shrink src tiles first (dst-tile floor 64) so the MXU M dim / per-step
    # overhead amortization stays healthy.
    while (_footprint_bytes(t_dst, t_src, num_heads, out_dim, hd_pad, cd) > budget
           and (t_dst > 64 or t_src > 128)):
        if t_src >= 2 * t_dst and t_src > 128:
            t_src = max(128, (t_src // 2) // 128 * 128)
        elif t_dst > 64:
            t_dst = max(64, _round_up(t_dst // 2, 32))
        else:
            t_src = max(128, (t_src // 2) // 128 * 128)
    need = _footprint_bytes(t_dst, t_src, num_heads, out_dim, hd_pad, cd)
    vmem_limit = int(max(32 << 20, min(0.75 * vmem_cap, 2 * need + (8 << 20))))

    n_dst_p = _round_up(n_dst, t_dst)
    n_src_p = _round_up(n_src, t_src)

    # ---- fused projection: ONE matmul for features + both score heads --------
    # s_src[u,h] = (x_u @ W_h^T) . a_src[h] = x_u @ (W_h^T a_src[h]); same for dst.
    w_heads = w_t.reshape(in_dim, num_heads, out_dim)
    w_src_sc = jnp.einsum('ihd,hd->ih', w_heads, a_src)          # (in_dim, H)
    w_dst_sc = jnp.einsum('ihd,hd->ih', w_heads, a_dst)          # (in_dim, H)
    w_all = jnp.concatenate([w_t, w_src_sc, w_dst_sc], axis=1).astype(f32)

    h_p = jnp.pad(h.astype(f32), ((0, n_src_p - n_src), (0, 0)))
    z_all = jnp.dot(h_p.astype(compute_dtype), w_all.astype(compute_dtype),
                    preferred_element_type=f32)                  # (N_src_p, H*D+2H) f32

    z_feat = z_all[:, :hd_total]                                 # (N_src_p, H*D)
    s_src = z_all[:, hd_total:hd_total + num_heads]              # (N_src_p, H)
    s_dst = z_all[:n_dst, hd_total + num_heads:]                 # (N_dst, H)

    # Per-head 3-D layout with a fused ones column: z_ext3[h, u] = [W_h x_u | 1]
    z3 = z_feat.reshape(n_src_p, num_heads, out_dim).transpose(1, 0, 2)
    z_ext3 = jnp.concatenate(
        [z3, jnp.ones((num_heads, n_src_p, 1), f32)], axis=2).astype(compute_dtype)

    ssrc_t = s_src.T.astype(compute_dtype)                       # (H, N_src_p)

    # Precomputed masked-softmax stabilizer (leaky_relu is monotone, so
    # leaky(s_dst + max_u s_src) upper-bounds every edge score in the row).
    max_ssrc = jnp.max(s_src[:n_src], axis=0)                    # (H,) real rows only
    m_dst = s_dst + max_ssrc[None, :]
    m_dst = jnp.maximum(m_dst, NEG_SLOPE * m_dst)
    dst_sc = jnp.concatenate([s_dst, m_dst], axis=1)             # (N_dst, 2H) f32
    dst_sc = jnp.pad(dst_sc, ((0, n_dst_p - n_dst), (0, 0)))

    zres = jnp.pad(z_feat[:n_dst], ((0, n_dst_p - n_dst), (0, 0)))   # (N_dst_p, H*D) f32

    adj_i8 = adj if adj.dtype == jnp.int8 else (adj != 0).astype(jnp.int8)
    adj_p = jnp.pad(adj_i8, ((0, n_dst_p - n_dst), (0, n_src_p - n_src)))

    kernel = functools.partial(
        _gat_kernel, num_heads=num_heads, out_dim=out_dim, hd_pad=hd_pad,
        use_residual=use_residual, compute_dtype=compute_dtype)

    grid = (n_dst_p // t_dst, n_src_p // t_src)
    in_specs = [
        pl.BlockSpec((num_heads, t_src, out_dim + 1), lambda i, j: (0, j, 0)),  # z_ext3
        pl.BlockSpec((num_heads, t_src), lambda i, j: (0, j)),                  # s_src
        pl.BlockSpec((t_dst, 2 * num_heads), lambda i, j: (i, 0)),              # dst scores
        pl.BlockSpec((t_dst, t_src), lambda i, j: (i, j)),                      # adj
        pl.BlockSpec((t_dst, hd_total), lambda i, j: (i, 0)),                   # residual z
    ]
    out_specs = pl.BlockSpec((t_dst, hd_pad), lambda i, j: (i, 0))
    scratch_shapes = [pltpu.VMEM((num_heads, t_dst, out_dim + 1), jnp.float32)]

    def _call(dim_sems):
        return pl.pallas_call(
            kernel,
            out_shape=jax.ShapeDtypeStruct((n_dst_p, hd_pad), jnp.float32),
            grid=grid,
            in_specs=in_specs,
            out_specs=out_specs,
            scratch_shapes=scratch_shapes,
            compiler_params=pltpu.CompilerParams(
                dimension_semantics=dim_sems,
                vmem_limit_bytes=vmem_limit),
        )(z_ext3, ssrc_t, dst_sc, adj_p, zres)

    if dst_semantics is not None:
        out_p = _call((dst_semantics, "arbitrary"))
    else:
        # CORE_PARALLEL splits dst tiles across v7x's 2 TensorCores; fall back
        # to the always-valid "parallel" if this generation/jaxlib rejects it.
        try:
            out_p = jax.block_until_ready(_call((pltpu.CORE_PARALLEL, "arbitrary")))
        except Exception:
            out_p = _call(("parallel", "arbitrary"))

    out = out_p[:n_dst, :hd_total]
    if merge == 'cat':
        return out
    # torch.mean(torch.stack(head_outs)) with no dim -> scalar mean over all
    # dst nodes, heads and features (kept literal to the PyTorch module).
    return jnp.mean(out)


def _reference(h, adj, w_t, a_src, a_dst, *, use_residual=False):
    """Pure-JAX f32 reference mirroring the PyTorch/DGL semantics."""
    n_dst = adj.shape[0]
    num_heads, out_dim = a_src.shape
    z = h @ w_t                                                  # (N_src, H*D)
    outs = []
    for hd in range(num_heads):
        z_h = z[:, hd * out_dim:(hd + 1) * out_dim]
        s_src = z_h @ a_src[hd]                                  # (N_src,)
        s_dst = z_h[:n_dst] @ a_dst[hd]                          # (N_dst,)
        e = s_dst[:, None] + s_src[None, :]
        e = jnp.where(e > 0, e, NEG_SLOPE * e)
        e = jnp.where(adj > 0, e, -jnp.inf)
        alpha = jax.nn.softmax(e, axis=1)
        o = alpha @ z_h
        if use_residual:
            o = o + z_h[:n_dst]
        outs.append(o)
    return jnp.concatenate(outs, axis=1)


if __name__ == "__main__":
    key = jax.random.PRNGKey(0)

    def make_inputs(k, in_dim, out_dim, num_heads, n_src, n_dst, p_edge=0.4):
        k_h, k_fc, k_attn, k_adj = jax.random.split(k, 4)
        h = jax.random.normal(k_h, (n_src, in_dim), jnp.float32)
        gain = 2.0 ** 0.5                                        # calculate_gain('relu')
        fc_std = gain * (2.0 / (in_dim + out_dim)) ** 0.5        # xavier_normal_
        attn_std = gain * (2.0 / (2 * out_dim + 1)) ** 0.5
        fc_w = fc_std * jax.random.normal(k_fc, (num_heads, out_dim, in_dim), jnp.float32)
        w_t = jnp.concatenate([fc_w[hd].T for hd in range(num_heads)], axis=1)
        attn_w = attn_std * jax.random.normal(k_attn, (num_heads, 2 * out_dim), jnp.float32)
        a_src, a_dst = attn_w[:, :out_dim], attn_w[:, out_dim:]
        rand_edges = jax.random.uniform(k_adj, (n_dst, n_src)) < p_edge
        self_loops = jnp.zeros((n_dst, n_src), bool).at[
            jnp.arange(n_dst), jnp.arange(n_dst)].set(True)
        adj = (rand_edges | self_loops).astype(jnp.int8)
        return h, adj, w_t, a_src, a_dst

    k1, k2 = jax.random.split(key)
    h, adj, w_t, a_src, a_dst = make_inputs(k1, in_dim=8, out_dim=16,
                                            num_heads=4, n_src=16, n_dst=8)

    # --- test 1: exact path (compute_dtype=f32), single tile, merge='cat' ----
    out = jax.block_until_ready(
        multi_head_gat(h, adj, w_t, a_src, a_dst, merge='cat',
                       compute_dtype=jnp.float32))
    ref = _reference(h, adj, w_t, a_src, a_dst)
    assert out.shape == (8, 64)
    assert jnp.allclose(out, ref, rtol=1e-3, atol=1e-3), "test1 mismatch vs reference"

    # --- test 2: multi-tile grid (3 dst x 2 src tiles) + residual, f32 -------
    h2, adj2, w_t2, a_src2, a_dst2 = make_inputs(k2, in_dim=24, out_dim=16,
                                                 num_heads=4, n_src=160, n_dst=80)
    out2 = jax.block_until_ready(
        multi_head_gat(h2, adj2, w_t2, a_src2, a_dst2, merge='cat',
                       use_residual=True, tile_dst=32, tile_src=128,
                       compute_dtype=jnp.float32))
    ref2 = _reference(h2, adj2, w_t2, a_src2, a_dst2, use_residual=True)
    assert out2.shape == (80, 64)
    assert jnp.allclose(out2, ref2, rtol=1e-3, atol=1e-3), "test2 mismatch vs reference"

    # --- test 3: default bf16 MXU/VPU/EUP path (v6e/v7x-native), loose tol ---
    out3 = jax.block_until_ready(
        multi_head_gat(h2, adj2, w_t2, a_src2, a_dst2, merge='cat',
                       use_residual=True, tile_dst=32, tile_src=128))
    assert out3.shape == (80, 64)
    assert jnp.allclose(out3, ref2, rtol=0.15, atol=0.15), "test3 (bf16) mismatch"

    # --- test 4: merge='mean' (scalar, literal torch semantics) --------------
    out4 = jax.block_until_ready(
        multi_head_gat(h, adj, w_t, a_src, a_dst, merge='mean',
                       compute_dtype=jnp.float32))
    assert jnp.allclose(out4, jnp.mean(ref), rtol=1e-3, atol=1e-3), "test4 mismatch"

    print("KERNEL_OK")
</pallas_src>

<mosaic_0001>
module attributes {stable_mosaic.version = 11 : i64} {
  func.func @_gat_kernel(%arg0: i32, %arg1: i32, %arg2: memref<4x128x17xf32, #tpu.memory_space<vmem>>, %arg3: memref<4x128xf32, #tpu.memory_space<vmem>>, %arg4: memref<32x8xf32, #tpu.memory_space<vmem>>, %arg5: memref<32x128xi8, #tpu.memory_space<vmem>>, %arg6: memref<32x64xf32, #tpu.memory_space<vmem>>, %arg7: memref<32x128xf32, #tpu.memory_space<vmem>>, %arg8: memref<4x32x17xf32, #tpu.memory_space<vmem>>) attributes {dimension_semantics = [#tpu.dimension_semantics<core_parallel>, #tpu.dimension_semantics<arbitrary>], iteration_bounds = array<i64: 1, 1>, scalar_prefetch = 0 : i64, scratch_operands = 1 : i64, tpu.core_type = #tpu.core_type<tc>, window_params = [{transform_indices = @transform_0, window_bounds = array<i64: 4, 128, 17>}, {transform_indices = @transform_1, window_bounds = array<i64: 4, 128>}, {transform_indices = @transform_2, window_bounds = array<i64: 32, 8>}, {transform_indices = @transform_3, window_bounds = array<i64: 32, 128>}, {transform_indices = @transform_4, window_bounds = array<i64: 32, 64>}, {transform_indices = @transform_5, window_bounds = array<i64: 32, 128>}]} {
    %c0_i32 = arith.constant 0 : i32
    %0 = arith.cmpi eq, %arg1, %c0_i32 : i32
    %1 = arith.extui %0 : i1 to i32
    %c0_i32_0 = arith.constant 0 : i32
    %2 = arith.cmpi ne, %1, %c0_i32_0 : i32
    scf.if %2 {
      %cst_59 = arith.constant 0.000000e+00 : f32
      %103 = vector.broadcast %cst_59 : f32 to vector<4x32x17xf32>
      %c0_60 = arith.constant 0 : index
      %c0_61 = arith.constant 0 : index
      %c0_62 = arith.constant 0 : index
      %104 = vector.load %arg8[%c0_60, %c0_61, %c0_62] : memref<4x32x17xf32, #tpu.memory_space<vmem>>, vector<4x32x17xf32>
      tpu.vector_store %arg8[%c0_60, %c0_61, %c0_62], %103 {strides = array<i32>} : memref<4x32x17xf32, #tpu.memory_space<vmem>>, vector<4x32x17xf32>,
    } else {
    }
    %c0 = arith.constant 0 : index
    %c0_1 = arith.constant 0 : index
    %3 = vector.load %arg5[%c0, %c0_1] : memref<32x128xi8, #tpu.memory_space<vmem>>, vector<32x128xi8>
    %c0_i8 = arith.constant 0 : i8
    %4 = vector.broadcast %c0_i8 : i8 to vector<32x128xi8>
    %5 = arith.cmpi ne, %3, %4 : vector<32x128xi8>
    %c0_2 = arith.constant 0 : index
    %c0_3 = arith.constant 0 : index
    %6 = vector.load %arg4[%c0_2, %c0_3] : memref<32x8xf32, #tpu.memory_space<vmem>>, vector<32x4xf32>
    %c0_4 = arith.constant 0 : index
    %c4 = arith.constant 4 : index
    %7 = vector.load %arg4[%c0_4, %c4] : memref<32x8xf32, #tpu.memory_space<vmem>>, vector<32x4xf32>
    %8 = vector.extract_strided_slice %6 {offsets = [0, 0], sizes = [32, 1], strides = [1, 1]} : vector<32x4xf32> to vector<32x1xf32>
    %9 = vector.extract_strided_slice %7 {offsets = [0, 0], sizes = [32, 1], strides = [1, 1]} : vector<32x4xf32> to vector<32x1xf32>
    %c0_5 = arith.constant 0 : index
    %c0_6 = arith.constant 0 : index
    %10 = vector.load %arg3[%c0_5, %c0_6] : memref<4x128xf32, #tpu.memory_space<vmem>>, vector<1x128xf32>
    %11 = vector.broadcast %8 : vector<32x1xf32> to vector<32x128xf32>
    %12 = vector.broadcast %10 : vector<1x128xf32> to vector<32x128xf32>
    %13 = arith.addf %11, %12 : vector<32x128xf32>
    %cst = arith.constant 0.00999999977 : f32
    %14 = vector.broadcast %cst : f32 to vector<32x128xf32>
    %15 = arith.mulf %14, %13 : vector<32x128xf32>
    %16 = arith.maximumf %13, %15 : vector<32x128xf32>
    %17 = vector.broadcast %9 : vector<32x1xf32> to vector<32x128xf32>
    %18 = arith.subf %16, %17 : vector<32x128xf32>
    %cst_7 = arith.constant -1.000000e+30 : f32
    %19 = vector.broadcast %cst_7 : f32 to vector<32x128xf32>
    %20 = arith.select %5, %18, %19 : vector<32x128xi1>, vector<32x128xf32>
    %21 = math.exp %20 : vector<32x128xf32>
    %c0_8 = arith.constant 0 : index
    %c0_9 = arith.constant 0 : index
    %c0_10 = arith.constant 0 : index
    %22 = vector.load %arg8[%c0_8, %c0_9, %c0_10] : memref<4x32x17xf32, #tpu.memory_space<vmem>>, vector<1x32x17xf32>
    %23 = vector.shape_cast %22 : vector<1x32x17xf32> to vector<32x17xf32>
    %c0_11 = arith.constant 0 : index
    %c0_12 = arith.constant 0 : index
    %c0_13 = arith.constant 0 : index
    %24 = vector.load %arg2[%c0_11, %c0_12, %c0_13] : memref<4x128x17xf32, #tpu.memory_space<vmem>>, vector<1x128x17xf32>
    %25 = vector.shape_cast %24 : vector<1x128x17xf32> to vector<128x17xf32>
    %cst_14 = arith.constant dense<0.000000e+00> : vector<32x17xf32>
    %26 = tpu.matmul %21, %25, %cst_14 {dimension_numbers = #tpu.dot_dimension_numbers<[1], [0], [0], [1], [0, 0, 1, 1], [], []>} : vector<32x128xf32>, vector<128x17xf32>, vector<32x17xf32> -> vector<32x17xf32>
    %27 = arith.addf %23, %26 : vector<32x17xf32>
    %c0_15 = arith.constant 0 : index
    %c0_16 = arith.constant 0 : index
    %c0_17 = arith.constant 0 : index
    %28 = vector.load %arg8[%c0_15, %c0_16, %c0_17] : memref<4x32x17xf32, #tpu.memory_space<vmem>>, vector<1x32x17xf32>
    %29 = vector.shape_cast %28 : vector<1x32x17xf32> to vector<32x17xf32>
    %30 = vector.shape_cast %27 : vector<32x17xf32> to vector<1x32x17xf32>
    tpu.vector_store %arg8[%c0_15, %c0_16, %c0_17], %30 {strides = array<i32>} : memref<4x32x17xf32, #tpu.memory_space<vmem>>, vector<1x32x17xf32>,
    %31 = vector.extract_strided_slice %6 {offsets = [0, 1], sizes = [32, 1], strides = [1, 1]} : vector<32x4xf32> to vector<32x1xf32>
    %32 = vector.extract_strided_slice %7 {offsets = [0, 1], sizes = [32, 1], strides = [1, 1]} : vector<32x4xf32> to vector<32x1xf32>
    %c1 = arith.constant 1 : index
    %c0_18 = arith.constant 0 : index
    %33 = vector.load %arg3[%c1, %c0_18] : memref<4x128xf32, #tpu.memory_space<vmem>>, vector<1x128xf32>
    %34 = vector.broadcast %31 : vector<32x1xf32> to vector<32x128xf32>
    %35 = vector.broadcast %33 : vector<1x128xf32> to vector<32x128xf32>
    %36 = arith.addf %34, %35 : vector<32x128xf32>
    %cst_19 = arith.constant 0.00999999977 : f32
    %37 = vector.broadcast %cst_19 : f32 to vector<32x128xf32>
    %38 = arith.mulf %37, %36 : vector<32x128xf32>
    %39 = arith.maximumf %36, %38 : vector<32x128xf32>
    %40 = vector.broadcast %32 : vector<32x1xf32> to vector<32x128xf32>
    %41 = arith.subf %39, %40 : vector<32x128xf32>
    %cst_20 = arith.constant -1.000000e+30 : f32
    %42 = vector.broadcast %cst_20 : f32 to vector<32x128xf32>
    %43 = arith.select %5, %41, %42 : vector<32x128xi1>, vector<32x128xf32>
    %44 = math.exp %43 : vector<32x128xf32>
    %c1_21 = arith.constant 1 : index
    %c0_22 = arith.constant 0 : index
    %c0_23 = arith.constant 0 : index
    %45 = vector.load %arg8[%c1_21, %c0_22, %c0_23] : memref<4x32x17xf32, #tpu.memory_space<vmem>>, vector<1x32x17xf32>
    %46 = vector.shape_cast %45 : vector<1x32x17xf32> to vector<32x17xf32>
    %c1_24 = arith.constant 1 : index
    %c0_25 = arith.constant 0 : index
    %c0_26 = arith.constant 0 : index
    %47 = vector.load %arg2[%c1_24, %c0_25, %c0_26] : memref<4x128x17xf32, #tpu.memory_space<vmem>>, vector<1x128x17xf32>
    %48 = vector.shape_cast %47 : vector<1x128x17xf32> to vector<128x17xf32>
    %cst_27 = arith.constant dense<0.000000e+00> : vector<32x17xf32>
    %49 = tpu.matmul %44, %48, %cst_27 {dimension_numbers = #tpu.dot_dimension_numbers<[1], [0], [0], [1], [0, 0, 1, 1], [], []>} : vector<32x128xf32>, vector<128x17xf32>, vector<32x17xf32> -> vector<32x17xf32>
    %50 = arith.addf %46, %49 : vector<32x17xf32>
    %c1_28 = arith.constant 1 : index
    %c0_29 = arith.constant 0 : index
    %c0_30 = arith.constant 0 : index
    %51 = vector.load %arg8[%c1_28, %c0_29, %c0_30] : memref<4x32x17xf32, #tpu.memory_space<vmem>>, vector<1x32x17xf32>
    %52 = vector.shape_cast %51 : vector<1x32x17xf32> to vector<32x17xf32>
    %53 = vector.shape_cast %50 : vector<32x17xf32> to vector<1x32x17xf32>
    tpu.vector_store %arg8[%c1_28, %c0_29, %c0_30], %53 {strides = array<i32>} : memref<4x32x17xf32, #tpu.memory_space<vmem>>, vector<1x32x17xf32>,
    %54 = vector.extract_strided_slice %6 {offsets = [0, 2], sizes = [32, 1], strides = [1, 1]} : vector<32x4xf32> to vector<32x1xf32>
    %55 = vector.extract_strided_slice %7 {offsets = [0, 2], sizes = [32, 1], strides = [1, 1]} : vector<32x4xf32> to vector<32x1xf32>
    %c2 = arith.constant 2 : index
    %c0_31 = arith.constant 0 : index
    %56 = vector.load %arg3[%c2, %c0_31] : memref<4x128xf32, #tpu.memory_space<vmem>>, vector<1x128xf32>
    %57 = vector.broadcast %54 : vector<32x1xf32> to vector<32x128xf32>
    %58 = vector.broadcast %56 : vector<1x128xf32> to vector<32x128xf32>
    %59 = arith.addf %57, %58 : vector<32x128xf32>
    %cst_32 = arith.constant 0.00999999977 : f32
    %60 = vector.broadcast %cst_32 : f32 to vector<32x128xf32>
    %61 = arith.mulf %60, %59 : vector<32x128xf32>
    %62 = arith.maximumf %59, %61 : vector<32x128xf32>
    %63 = vector.broadcast %55 : vector<32x1xf32> to vector<32x128xf32>
    %64 = arith.subf %62, %63 : vector<32x128xf32>
    %cst_33 = arith.constant -1.000000e+30 : f32
    %65 = vector.broadcast %cst_33 : f32 to vector<32x128xf32>
    %66 = arith.select %5, %64, %65 : vector<32x128xi1>, vector<32x128xf32>
    %67 = math.exp %66 : vector<32x128xf32>
    %c2_34 = arith.constant 2 : index
    %c0_35 = arith.constant 0 : index
    %c0_36 = arith.constant 0 : index
    %68 = vector.load %arg8[%c2_34, %c0_35, %c0_36] : memref<4x32x17xf32, #tpu.memory_space<vmem>>, vector<1x32x17xf32>
    %69 = vector.shape_cast %68 : vector<1x32x17xf32> to vector<32x17xf32>
    %c2_37 = arith.constant 2 : index
    %c0_38 = arith.constant 0 : index
    %c0_39 = arith.constant 0 : index
    %70 = vector.load %arg2[%c2_37, %c0_38, %c0_39] : memref<4x128x17xf32, #tpu.memory_space<vmem>>, vector<1x128x17xf32>
    %71 = vector.shape_cast %70 : vector<1x128x17xf32> to vector<128x17xf32>
    %cst_40 = arith.constant dense<0.000000e+00> : vector<32x17xf32>
    %72 = tpu.matmul %67, %71, %cst_40 {dimension_numbers = #tpu.dot_dimension_numbers<[1], [0], [0], [1], [0, 0, 1, 1], [], []>} : vector<32x128xf32>, vector<128x17xf32>, vector<32x17xf32> -> vector<32x17xf32>
    %73 = arith.addf %69, %72 : vector<32x17xf32>
    %c2_41 = arith.constant 2 : index
    %c0_42 = arith.constant 0 : index
    %c0_43 = arith.constant 0 : index
    %74 = vector.load %arg8[%c2_41, %c0_42, %c0_43] : memref<4x32x17xf32, #tpu.memory_space<vmem>>, vector<1x32x17xf32>
    %75 = vector.shape_cast %74 : vector<1x32x17xf32> to vector<32x17xf32>
    %76 = vector.shape_cast %73 : vector<32x17xf32> to vector<1x32x17xf32>
    tpu.vector_store %arg8[%c2_41, %c0_42, %c0_43], %76 {strides = array<i32>} : memref<4x32x17xf32, #tpu.memory_space<vmem>>, vector<1x32x17xf32>,
    %77 = vector.extract_strided_slice %6 {offsets = [0, 3], sizes = [32, 1], strides = [1, 1]} : vector<32x4xf32> to vector<32x1xf32>
    %78 = vector.extract_strided_slice %7 {offsets = [0, 3], sizes = [32, 1], strides = [1, 1]} : vector<32x4xf32> to vector<32x1xf32>
    %c3 = arith.constant 3 : index
    %c0_44 = arith.constant 0 : index
    %79 = vector.load %arg3[%c3, %c0_44] : memref<4x128xf32, #tpu.memory_space<vmem>>, vector<1x128xf32>
    %80 = vector.broadcast %77 : vector<32x1xf32> to vector<32x128xf32>
    %81 = vector.broadcast %79 : vector<1x128xf32> to vector<32x128xf32>
    %82 = arith.addf %80, %81 : vector<32x128xf32>
    %cst_45 = arith.constant 0.00999999977 : f32
    %83 = vector.broadcast %cst_45 : f32 to vector<32x128xf32>
    %84 = arith.mulf %83, %82 : vector<32x128xf32>
    %85 = arith.maximumf %82, %84 : vector<32x128xf32>
    %86 = vector.broadcast %78 : vector<32x1xf32> to vector<32x128xf32>
    %87 = arith.subf %85, %86 : vector<32x128xf32>
    %cst_46 = arith.constant -1.000000e+30 : f32
    %88 = vector.broadcast %cst_46 : f32 to vector<32x128xf32>
    %89 = arith.select %5, %87, %88 : vector<32x128xi1>, vector<32x128xf32>
    %90 = math.exp %89 : vector<32x128xf32>
    %c3_47 = arith.constant 3 : index
    %c0_48 = arith.constant 0 : index
    %c0_49 = arith.constant 0 : index
    %91 = vector.load %arg8[%c3_47, %c0_48, %c0_49] : memref<4x32x17xf32, #tpu.memory_space<vmem>>, vector<1x32x17xf32>
    %92 = vector.shape_cast %91 : vector<1x32x17xf32> to vector<32x17xf32>
    %c3_50 = arith.constant 3 : index
    %c0_51 = arith.constant 0 : index
    %c0_52 = arith.constant 0 : index
    %93 = vector.load %arg2[%c3_50, %c0_51, %c0_52] : memref<4x128x17xf32, #tpu.memory_space<vmem>>, vector<1x128x17xf32>
    %94 = vector.shape_cast %93 : vector<1x128x17xf32> to vector<128x17xf32>
    %cst_53 = arith.constant dense<0.000000e+00> : vector<32x17xf32>
    %95 = tpu.matmul %90, %94, %cst_53 {dimension_numbers = #tpu.dot_dimension_numbers<[1], [0], [0], [1], [0, 0, 1, 1], [], []>} : vector<32x128xf32>, vector<128x17xf32>, vector<32x17xf32> -> vector<32x17xf32>
    %96 = arith.addf %92, %95 : vector<32x17xf32>
    %c3_54 = arith.constant 3 : index
    %c0_55 = arith.constant 0 : index
    %c0_56 = arith.constant 0 : index
    %97 = vector.load %arg8[%c3_54, %c0_55, %c0_56] : memref<4x32x17xf32, #tpu.memory_space<vmem>>, vector<1x32x17xf32>
    %98 = vector.shape_cast %97 : vector<1x32x17xf32> to vector<32x17xf32>
    %99 = vector.shape_cast %96 : vector<32x17xf32> to vector<1x32x17xf32>
    tpu.vector_store %arg8[%c3_54, %c0_55, %c0_56], %99 {strides = array<i32>} : memref<4x32x17xf32, #tpu.memory_space<vmem>>, vector<1x32x17xf32>,
    %c0_i32_57 = arith.constant 0 : i32
    %100 = arith.cmpi eq, %arg1, %c0_i32_57 : i32
    %101 = arith.extui %100 : i1 to i32
    %c0_i32_58 = arith.constant 0 : i32
    %102 = arith.cmpi ne, %101, %c0_i32_58 : i32
    scf.if %102 {
      %c0_59 = arith.constant 0 : index
      %c0_60 = arith.constant 0 : index
      %c0_61 = arith.constant 0 : index
      %103 = vector.load %arg8[%c0_59, %c0_60, %c0_61] : memref<4x32x17xf32, #tpu.memory_space<vmem>>, vector<1x32x17xf32>
      %104 = vector.shape_cast %103 : vector<1x32x17xf32> to vector<32x17xf32>
      %105 = vector.extract_strided_slice %104 {offsets = [0, 0], sizes = [32, 16], strides = [1, 1]} : vector<32x17xf32> to vector<32x16xf32>
      %106 = vector.extract_strided_slice %104 {offsets = [0, 16], sizes = [32, 1], strides = [1, 1]} : vector<32x17xf32> to vector<32x1xf32>
      %107 = tpu.reciprocal %106 {approx = true} : vector<32x1xf32> -> vector<32x1xf32>
      %108 = arith.mulf %106, %107 : vector<32x1xf32>
      %cst_62 = arith.constant 2.000000e+00 : f32
      %109 = vector.broadcast %cst_62 : f32 to vector<32x1xf32>
      %110 = arith.subf %109, %108 : vector<32x1xf32>
      %111 = arith.mulf %107, %110 : vector<32x1xf32>
      %112 = vector.broadcast %111 : vector<32x1xf32> to vector<32x16xf32>
      %113 = arith.mulf %105, %112 : vector<32x16xf32>
      %c1_63 = arith.constant 1 : index
      %c0_64 = arith.constant 0 : index
      %c0_65 = arith.constant 0 : index
      %114 = vector.load %arg8[%c1_63, %c0_64, %c0_65] : memref<4x32x17xf32, #tpu.memory_space<vmem>>, vector<1x32x17xf32>
      %115 = vector.shape_cast %114 : vector<1x32x17xf32> to vector<32x17xf32>
      %116 = vector.extract_strided_slice %115 {offsets = [0, 0], sizes = [32, 16], strides = [1, 1]} : vector<32x17xf32> to vector<32x16xf32>
      %117 = vector.extract_strided_slice %115 {offsets = [0, 16], sizes = [32, 1], strides = [1, 1]} : vector<32x17xf32> to vector<32x1xf32>
      %118 = tpu.reciprocal %117 {approx = true} : vector<32x1xf32> -> vector<32x1xf32>
      %119 = arith.mulf %117, %118 : vector<32x1xf32>
      %cst_66 = arith.constant 2.000000e+00 : f32
      %120 = vector.broadcast %cst_66 : f32 to vector<32x1xf32>
      %121 = arith.subf %120, %119 : vector<32x1xf32>
      %122 = arith.mulf %118, %121 : vector<32x1xf32>
      %123 = vector.broadcast %122 : vector<32x1xf32> to vector<32x16xf32>
      %124 = arith.mulf %116, %123 : vector<32x16xf32>
      %c2_67 = arith.constant 2 : index
      %c0_68 = arith.constant 0 : index
      %c0_69 = arith.constant 0 : index
      %125 = vector.load %arg8[%c2_67, %c0_68, %c0_69] : memref<4x32x17xf32, #tpu.memory_space<vmem>>, vector<1x32x17xf32>
      %126 = vector.shape_cast %125 : vector<1x32x17xf32> to vector<32x17xf32>
      %127 = vector.extract_strided_slice %126 {offsets = [0, 0], sizes = [32, 16], strides = [1, 1]} : vector<32x17xf32> to vector<32x16xf32>
      %128 = vector.extract_strided_slice %126 {offsets = [0, 16], sizes = [32, 1], strides = [1, 1]} : vector<32x17xf32> to vector<32x1xf32>
      %129 = tpu.reciprocal %128 {approx = true} : vector<32x1xf32> -> vector<32x1xf32>
      %130 = arith.mulf %128, %129 : vector<32x1xf32>
      %cst_70 = arith.constant 2.000000e+00 : f32
      %131 = vector.broadcast %cst_70 : f32 to vector<32x1xf32>
      %132 = arith.subf %131, %130 : vector<32x1xf32>
      %133 = arith.mulf %129, %132 : vector<32x1xf32>
      %134 = vector.broadcast %133 : vector<32x1xf32> to vector<32x16xf32>
      %135 = arith.mulf %127, %134 : vector<32x16xf32>
      %c3_71 = arith.constant 3 : index
      %c0_72 = arith.constant 0 : index
      %c0_73 = arith.constant 0 : index
      %136 = vector.load %arg8[%c3_71, %c0_72, %c0_73] : memref<4x32x17xf32, #tpu.memory_space<vmem>>, vector<1x32x17xf32>
      %137 = vector.shape_cast %136 : vector<1x32x17xf32> to vector<32x17xf32>
      %138 = vector.extract_strided_slice %137 {offsets = [0, 0], sizes = [32, 16], strides = [1, 1]} : vector<32x17xf32> to vector<32x16xf32>
      %139 = vector.extract_strided_slice %137 {offsets = [0, 16], sizes = [32, 1], strides = [1, 1]} : vector<32x17xf32> to vector<32x1xf32>
      %140 = tpu.reciprocal %139 {approx = true} : vector<32x1xf32> -> vector<32x1xf32>
      %141 = arith.mulf %139, %140 : vector<32x1xf32>
      %cst_74 = arith.constant 2.000000e+00 : f32
      %142 = vector.broadcast %cst_74 : f32 to vector<32x1xf32>
      %143 = arith.subf %142, %141 : vector<32x1xf32>
      %144 = arith.mulf %140, %143 : vector<32x1xf32>
      %145 = vector.broadcast %144 : vector<32x1xf32> to vector<32x16xf32>
      %146 = arith.mulf %138, %145 : vector<32x16xf32>
      %cst_75 = arith.constant 0.000000e+00 : f32
      %147 = vector.broadcast %cst_75 : f32 to vector<32x64xf32>
      %148 = tpu.concatenate %113, %124, %135, %146, %147 in 1 : vector<32x16xf32>, vector<32x16xf32>, vector<32x16xf32>, vector<32x16xf32>, vector<32x64xf32> -> vector<32x128xf32>
      %c0_76 = arith.constant 0 : index
      %c0_77 = arith.constant 0 : index
      %149 = vector.load %arg7[%c0_76, %c0_77] : memref<32x128xf32, #tpu.memory_space<vmem>>, vector<32x128xf32>
      tpu.vector_store %arg7[%c0_76, %c0_77], %148 {strides = array<i32>} : memref<32x128xf32, #tpu.memory_space<vmem>>, vector<32x128xf32>,
    } else {
    }
    return
  }
  func.func @transform_0(%arg0: i32, %arg1: i32) -> (i32, i32, i32) {
    %c0_i32 = arith.constant 0 : i32
    %c0_i32_0 = arith.constant 0 : i32
    %c0_i32_1 = arith.constant 0 : i32
    return %c0_i32, %arg1, %c0_i32_0 : i32, i32, i32
  }
  func.func @transform_1(%arg0: i32, %arg1: i32) -> (i32, i32) {
    %c0_i32 = arith.constant 0 : i32
    %c0_i32_0 = arith.constant 0 : i32
    return %c0_i32, %arg1 : i32, i32
  }
  func.func @transform_2(%arg0: i32, %arg1: i32) -> (i32, i32) {
    %c0_i32 = arith.constant 0 : i32
    %c0_i32_0 = arith.constant 0 : i32
    return %arg0, %c0_i32 : i32, i32
  }
  func.func @transform_3(%arg0: i32, %arg1: i32) -> (i32, i32) {
    %c0_i32 = arith.constant 0 : i32
    return %arg0, %arg1 : i32, i32
  }
  func.func @transform_4(%arg0: i32, %arg1: i32) -> (i32, i32) {
    %c0_i32 = arith.constant 0 : i32
    %c0_i32_0 = arith.constant 0 : i32
    return %arg0, %c0_i32 : i32, i32
  }
  func.func @transform_5(%arg0: i32, %arg1: i32) -> (i32, i32) {
    %c0_i32 = arith.constant 0 : i32
    %c0_i32_0 = arith.constant 0 : i32
    return %arg0, %c0_i32 : i32, i32
  }
}

module attributes {stable_mosaic.version = 11 : i64} {
  func.func @_gat_kernel(%arg0: i32, %arg1: i32, %arg2: memref<4x128x17xf32, #tpu.memory_space<vmem>>, %arg3: memref<4x128xf32, #tpu.memory_space<vmem>>, %arg4: memref<32x8xf32, #tpu.memory_space<vmem>>, %arg5: memref<32x128xi8, #tpu.memory_space<vmem>>, %arg6: memref<32x64xf32, #tpu.memory_space<vmem>>, %arg7: memref<32x128xf32, #tpu.memory_space<vmem>>, %arg8: memref<4x32x17xf32, #tpu.memory_space<vmem>>) attributes {dimension_semantics = [#tpu.dimension_semantics<parallel>, #tpu.dimension_semantics<arbitrary>], iteration_bounds = array<i64: 1, 1>, scalar_prefetch = 0 : i64, scratch_operands = 1 : i64, tpu.core_type = #tpu.core_type<tc>, window_params = [{transform_indices = @transform_0, window_bounds = array<i64: 4, 128, 17>}, {transform_indices = @transform_1, window_bounds = array<i64: 4, 128>}, {transform_indices = @transform_2, window_bounds = array<i64: 32, 8>}, {transform_indices = @transform_3, window_bounds = array<i64: 32, 128>}, {transform_indices = @transform_4, window_bounds = array<i64: 32, 64>}, {transform_indices = @transform_5, window_bounds = array<i64: 32, 128>}]} {
    %c0_i32 = arith.constant 0 : i32
    %0 = arith.cmpi eq, %arg1, %c0_i32 : i32
    %1 = arith.extui %0 : i1 to i32
    %c0_i32_0 = arith.constant 0 : i32
    %2 = arith.cmpi ne, %1, %c0_i32_0 : i32
    scf.if %2 {
      %cst_59 = arith.constant 0.000000e+00 : f32
      %103 = vector.broadcast %cst_59 : f32 to vector<4x32x17xf32>
      %c0_60 = arith.constant 0 : index
      %c0_61 = arith.constant 0 : index
      %c0_62 = arith.constant 0 : index
      %104 = vector.load %arg8[%c0_60, %c0_61, %c0_62] : memref<4x32x17xf32, #tpu.memory_space<vmem>>, vector<4x32x17xf32>
      tpu.vector_store %arg8[%c0_60, %c0_61, %c0_62], %103 {strides = array<i32>} : memref<4x32x17xf32, #tpu.memory_space<vmem>>, vector<4x32x17xf32>,
    } else {
    }
    %c0 = arith.constant 0 : index
    %c0_1 = arith.constant 0 : index
    %3 = vector.load %arg5[%c0, %c0_1] : memref<32x128xi8, #tpu.memory_space<vmem>>, vector<32x128xi8>
    %c0_i8 = arith.constant 0 : i8
    %4 = vector.broadcast %c0_i8 : i8 to vector<32x128xi8>
    %5 = arith.cmpi ne, %3, %4 : vector<32x128xi8>
    %c0_2 = arith.constant 0 : index
    %c0_3 = arith.constant 0 : index
    %6 = vector.load %arg4[%c0_2, %c0_3] : memref<32x8xf32, #tpu.memory_space<vmem>>, vector<32x4xf32>
    %c0_4 = arith.constant 0 : index
    %c4 = arith.constant 4 : index
    %7 = vector.load %arg4[%c0_4, %c4] : memref<32x8xf32, #tpu.memory_space<vmem>>, vector<32x4xf32>
    %8 = vector.extract_strided_slice %6 {offsets = [0, 0], sizes = [32, 1], strides = [1, 1]} : vector<32x4xf32> to vector<32x1xf32>
    %9 = vector.extract_strided_slice %7 {offsets = [0, 0], sizes = [32, 1], strides = [1, 1]} : vector<32x4xf32> to vector<32x1xf32>
    %c0_5 = arith.constant 0 : index
    %c0_6 = arith.constant 0 : index
    %10 = vector.load %arg3[%c0_5, %c0_6] : memref<4x128xf32, #tpu.memory_space<vmem>>, vector<1x128xf32>
    %11 = vector.broadcast %8 : vector<32x1xf32> to vector<32x128xf32>
    %12 = vector.broadcast %10 : vector<1x128xf32> to vector<32x128xf32>
    %13 = arith.addf %11, %12 : vector<32x128xf32>
    %cst = arith.constant 0.00999999977 : f32
    %14 = vector.broadcast %cst : f32 to vector<32x128xf32>
    %15 = arith.mulf %14, %13 : vector<32x128xf32>
    %16 = arith.maximumf %13, %15 : vector<32x128xf32>
    %17 = vector.broadcast %9 : vector<32x1xf32> to vector<32x128xf32>
    %18 = arith.subf %16, %17 : vector<32x128xf32>
    %cst_7 = arith.constant -1.000000e+30 : f32
    %19 = vector.broadcast %cst_7 : f32 to vector<32x128xf32>
    %20 = arith.select %5, %18, %19 : vector<32x128xi1>, vector<32x128xf32>
    %21 = math.exp %20 : vector<32x128xf32>
    %c0_8 = arith.constant 0 : index
    %c0_9 = arith.constant 0 : index
    %c0_10 = arith.constant 0 : index
    %22 = vector.load %arg8[%c0_8, %c0_9, %c0_10] : memref<4x32x17xf32, #tpu.memory_space<vmem>>, vector<1x32x17xf32>
    %23 = vector.shape_cast %22 : vector<1x32x17xf32> to vector<32x17xf32>
    %c0_11 = arith.constant 0 : index
    %c0_12 = arith.constant 0 : index
    %c0_13 = arith.constant 0 : index
    %24 = vector.load %arg2[%c0_11, %c0_12, %c0_13] : memref<4x128x17xf32, #tpu.memory_space<vmem>>, vector<1x128x17xf32>
    %25 = vector.shape_cast %24 : vector<1x128x17xf32> to vector<128x17xf32>
    %cst_14 = arith.constant dense<0.000000e+00> : vector<32x17xf32>
    %26 = tpu.matmul %21, %25, %cst_14 {dimension_numbers = #tpu.dot_dimension_numbers<[1], [0], [0], [1], [0, 0, 1, 1], [], []>} : vector<32x128xf32>, vector<128x17xf32>, vector<32x17xf32> -> vector<32x17xf32>
    %27 = arith.addf %23, %26 : vector<32x17xf32>
    %c0_15 = arith.constant 0 : index
    %c0_16 = arith.constant 0 : index
    %c0_17 = arith.constant 0 : index
    %28 = vector.load %arg8[%c0_15, %c0_16, %c0_17] : memref<4x32x17xf32, #tpu.memory_space<vmem>>, vector<1x32x17xf32>
    %29 = vector.shape_cast %28 : vector<1x32x17xf32> to vector<32x17xf32>
    %30 = vector.shape_cast %27 : vector<32x17xf32> to vector<1x32x17xf32>
    tpu.vector_store %arg8[%c0_15, %c0_16, %c0_17], %30 {strides = array<i32>} : memref<4x32x17xf32, #tpu.memory_space<vmem>>, vector<1x32x17xf32>,
    %31 = vector.extract_strided_slice %6 {offsets = [0, 1], sizes = [32, 1], strides = [1, 1]} : vector<32x4xf32> to vector<32x1xf32>
    %32 = vector.extract_strided_slice %7 {offsets = [0, 1], sizes = [32, 1], strides = [1, 1]} : vector<32x4xf32> to vector<32x1xf32>
    %c1 = arith.constant 1 : index
    %c0_18 = arith.constant 0 : index
    %33 = vector.load %arg3[%c1, %c0_18] : memref<4x128xf32, #tpu.memory_space<vmem>>, vector<1x128xf32>
    %34 = vector.broadcast %31 : vector<32x1xf32> to vector<32x128xf32>
    %35 = vector.broadcast %33 : vector<1x128xf32> to vector<32x128xf32>
    %36 = arith.addf %34, %35 : vector<32x128xf32>
    %cst_19 = arith.constant 0.00999999977 : f32
    %37 = vector.broadcast %cst_19 : f32 to vector<32x128xf32>
    %38 = arith.mulf %37, %36 : vector<32x128xf32>
    %39 = arith.maximumf %36, %38 : vector<32x128xf32>
    %40 = vector.broadcast %32 : vector<32x1xf32> to vector<32x128xf32>
    %41 = arith.subf %39, %40 : vector<32x128xf32>
    %cst_20 = arith.constant -1.000000e+30 : f32
    %42 = vector.broadcast %cst_20 : f32 to vector<32x128xf32>
    %43 = arith.select %5, %41, %42 : vector<32x128xi1>, vector<32x128xf32>
    %44 = math.exp %43 : vector<32x128xf32>
    %c1_21 = arith.constant 1 : index
    %c0_22 = arith.constant 0 : index
    %c0_23 = arith.constant 0 : index
    %45 = vector.load %arg8[%c1_21, %c0_22, %c0_23] : memref<4x32x17xf32, #tpu.memory_space<vmem>>, vector<1x32x17xf32>
    %46 = vector.shape_cast %45 : vector<1x32x17xf32> to vector<32x17xf32>
    %c1_24 = arith.constant 1 : index
    %c0_25 = arith.constant 0 : index
    %c0_26 = arith.constant 0 : index
    %47 = vector.load %arg2[%c1_24, %c0_25, %c0_26] : memref<4x128x17xf32, #tpu.memory_space<vmem>>, vector<1x128x17xf32>
    %48 = vector.shape_cast %47 : vector<1x128x17xf32> to vector<128x17xf32>
    %cst_27 = arith.constant dense<0.000000e+00> : vector<32x17xf32>
    %49 = tpu.matmul %44, %48, %cst_27 {dimension_numbers = #tpu.dot_dimension_numbers<[1], [0], [0], [1], [0, 0, 1, 1], [], []>} : vector<32x128xf32>, vector<128x17xf32>, vector<32x17xf32> -> vector<32x17xf32>
    %50 = arith.addf %46, %49 : vector<32x17xf32>
    %c1_28 = arith.constant 1 : index
    %c0_29 = arith.constant 0 : index
    %c0_30 = arith.constant 0 : index
    %51 = vector.load %arg8[%c1_28, %c0_29, %c0_30] : memref<4x32x17xf32, #tpu.memory_space<vmem>>, vector<1x32x17xf32>
    %52 = vector.shape_cast %51 : vector<1x32x17xf32> to vector<32x17xf32>
    %53 = vector.shape_cast %50 : vector<32x17xf32> to vector<1x32x17xf32>
    tpu.vector_store %arg8[%c1_28, %c0_29, %c0_30], %53 {strides = array<i32>} : memref<4x32x17xf32, #tpu.memory_space<vmem>>, vector<1x32x17xf32>,
    %54 = vector.extract_strided_slice %6 {offsets = [0, 2], sizes = [32, 1], strides = [1, 1]} : vector<32x4xf32> to vector<32x1xf32>
    %55 = vector.extract_strided_slice %7 {offsets = [0, 2], sizes = [32, 1], strides = [1, 1]} : vector<32x4xf32> to vector<32x1xf32>
    %c2 = arith.constant 2 : index
    %c0_31 = arith.constant 0 : index
    %56 = vector.load %arg3[%c2, %c0_31] : memref<4x128xf32, #tpu.memory_space<vmem>>, vector<1x128xf32>
    %57 = vector.broadcast %54 : vector<32x1xf32> to vector<32x128xf32>
    %58 = vector.broadcast %56 : vector<1x128xf32> to vector<32x128xf32>
    %59 = arith.addf %57, %58 : vector<32x128xf32>
    %cst_32 = arith.constant 0.00999999977 : f32
    %60 = vector.broadcast %cst_32 : f32 to vector<32x128xf32>
    %61 = arith.mulf %60, %59 : vector<32x128xf32>
    %62 = arith.maximumf %59, %61 : vector<32x128xf32>
    %63 = vector.broadcast %55 : vector<32x1xf32> to vector<32x128xf32>
    %64 = arith.subf %62, %63 : vector<32x128xf32>
    %cst_33 = arith.constant -1.000000e+30 : f32
    %65 = vector.broadcast %cst_33 : f32 to vector<32x128xf32>
    %66 = arith.select %5, %64, %65 : vector<32x128xi1>, vector<32x128xf32>
    %67 = math.exp %66 : vector<32x128xf32>
    %c2_34 = arith.constant 2 : index
    %c0_35 = arith.constant 0 : index
    %c0_36 = arith.constant 0 : index
    %68 = vector.load %arg8[%c2_34, %c0_35, %c0_36] : memref<4x32x17xf32, #tpu.memory_space<vmem>>, vector<1x32x17xf32>
    %69 = vector.shape_cast %68 : vector<1x32x17xf32> to vector<32x17xf32>
    %c2_37 = arith.constant 2 : index
    %c0_38 = arith.constant 0 : index
    %c0_39 = arith.constant 0 : index
    %70 = vector.load %arg2[%c2_37, %c0_38, %c0_39] : memref<4x128x17xf32, #tpu.memory_space<vmem>>, vector<1x128x17xf32>
    %71 = vector.shape_cast %70 : vector<1x128x17xf32> to vector<128x17xf32>
    %cst_40 = arith.constant dense<0.000000e+00> : vector<32x17xf32>
    %72 = tpu.matmul %67, %71, %cst_40 {dimension_numbers = #tpu.dot_dimension_numbers<[1], [0], [0], [1], [0, 0, 1, 1], [], []>} : vector<32x128xf32>, vector<128x17xf32>, vector<32x17xf32> -> vector<32x17xf32>
    %73 = arith.addf %69, %72 : vector<32x17xf32>
    %c2_41 = arith.constant 2 : index
    %c0_42 = arith.constant 0 : index
    %c0_43 = arith.constant 0 : index
    %74 = vector.load %arg8[%c2_41, %c0_42, %c0_43] : memref<4x32x17xf32, #tpu.memory_space<vmem>>, vector<1x32x17xf32>
    %75 = vector.shape_cast %74 : vector<1x32x17xf32> to vector<32x17xf32>
    %76 = vector.shape_cast %73 : vector<32x17xf32> to vector<1x32x17xf32>
    tpu.vector_store %arg8[%c2_41, %c0_42, %c0_43], %76 {strides = array<i32>} : memref<4x32x17xf32, #tpu.memory_space<vmem>>, vector<1x32x17xf32>,
    %77 = vector.extract_strided_slice %6 {offsets = [0, 3], sizes = [32, 1], strides = [1, 1]} : vector<32x4xf32> to vector<32x1xf32>
    %78 = vector.extract_strided_slice %7 {offsets = [0, 3], sizes = [32, 1], strides = [1, 1]} : vector<32x4xf32> to vector<32x1xf32>
    %c3 = arith.constant 3 : index
    %c0_44 = arith.constant 0 : index
    %79 = vector.load %arg3[%c3, %c0_44] : memref<4x128xf32, #tpu.memory_space<vmem>>, vector<1x128xf32>
    %80 = vector.broadcast %77 : vector<32x1xf32> to vector<32x128xf32>
    %81 = vector.broadcast %79 : vector<1x128xf32> to vector<32x128xf32>
    %82 = arith.addf %80, %81 : vector<32x128xf32>
    %cst_45 = arith.constant 0.00999999977 : f32
    %83 = vector.broadcast %cst_45 : f32 to vector<32x128xf32>
    %84 = arith.mulf %83, %82 : vector<32x128xf32>
    %85 = arith.maximumf %82, %84 : vector<32x128xf32>
    %86 = vector.broadcast %78 : vector<32x1xf32> to vector<32x128xf32>
    %87 = arith.subf %85, %86 : vector<32x128xf32>
    %cst_46 = arith.constant -1.000000e+30 : f32
    %88 = vector.broadcast %cst_46 : f32 to vector<32x128xf32>
    %89 = arith.select %5, %87, %88 : vector<32x128xi1>, vector<32x128xf32>
    %90 = math.exp %89 : vector<32x128xf32>
    %c3_47 = arith.constant 3 : index
    %c0_48 = arith.constant 0 : index
    %c0_49 = arith.constant 0 : index
    %91 = vector.load %arg8[%c3_47, %c0_48, %c0_49] : memref<4x32x17xf32, #tpu.memory_space<vmem>>, vector<1x32x17xf32>
    %92 = vector.shape_cast %91 : vector<1x32x17xf32> to vector<32x17xf32>
    %c3_50 = arith.constant 3 : index
    %c0_51 = arith.constant 0 : index
    %c0_52 = arith.constant 0 : index
    %93 = vector.load %arg2[%c3_50, %c0_51, %c0_52] : memref<4x128x17xf32, #tpu.memory_space<vmem>>, vector<1x128x17xf32>
    %94 = vector.shape_cast %93 : vector<1x128x17xf32> to vector<128x17xf32>
    %cst_53 = arith.constant dense<0.000000e+00> : vector<32x17xf32>
    %95 = tpu.matmul %90, %94, %cst_53 {dimension_numbers = #tpu.dot_dimension_numbers<[1], [0], [0], [1], [0, 0, 1, 1], [], []>} : vector<32x128xf32>, vector<128x17xf32>, vector<32x17xf32> -> vector<32x17xf32>
    %96 = arith.addf %92, %95 : vector<32x17xf32>
    %c3_54 = arith.constant 3 : index
    %c0_55 = arith.constant 0 : index
    %c0_56 = arith.constant 0 : index
    %97 = vector.load %arg8[%c3_54, %c0_55, %c0_56] : memref<4x32x17xf32, #tpu.memory_space<vmem>>, vector<1x32x17xf32>
    %98 = vector.shape_cast %97 : vector<1x32x17xf32> to vector<32x17xf32>
    %99 = vector.shape_cast %96 : vector<32x17xf32> to vector<1x32x17xf32>
    tpu.vector_store %arg8[%c3_54, %c0_55, %c0_56], %99 {strides = array<i32>} : memref<4x32x17xf32, #tpu.memory_space<vmem>>, vector<1x32x17xf32>,
    %c0_i32_57 = arith.constant 0 : i32
    %100 = arith.cmpi eq, %arg1, %c0_i32_57 : i32
    %101 = arith.extui %100 : i1 to i32
    %c0_i32_58 = arith.constant 0 : i32
    %102 = arith.cmpi ne, %101, %c0_i32_58 : i32
    scf.if %102 {
      %c0_59 = arith.constant 0 : index
      %c0_60 = arith.constant 0 : index
      %c0_61 = arith.constant 0 : index
      %103 = vector.load %arg8[%c0_59, %c0_60, %c0_61] : memref<4x32x17xf32, #tpu.memory_space<vmem>>, vector<1x32x17xf32>
      %104 = vector.shape_cast %103 : vector<1x32x17xf32> to vector<32x17xf32>
      %105 = vector.extract_strided_slice %104 {offsets = [0, 0], sizes = [32, 16], strides = [1, 1]} : vector<32x17xf32> to vector<32x16xf32>
      %106 = vector.extract_strided_slice %104 {offsets = [0, 16], sizes = [32, 1], strides = [1, 1]} : vector<32x17xf32> to vector<32x1xf32>
      %107 = tpu.reciprocal %106 {approx = true} : vector<32x1xf32> -> vector<32x1xf32>
      %108 = arith.mulf %106, %107 : vector<32x1xf32>
      %cst_62 = arith.constant 2.000000e+00 : f32
      %109 = vector.broadcast %cst_62 : f32 to vector<32x1xf32>
      %110 = arith.subf %109, %108 : vector<32x1xf32>
      %111 = arith.mulf %107, %110 : vector<32x1xf32>
      %112 = vector.broadcast %111 : vector<32x1xf32> to vector<32x16xf32>
      %113 = arith.mulf %105, %112 : vector<32x16xf32>
      %c1_63 = arith.constant 1 : index
      %c0_64 = arith.constant 0 : index
      %c0_65 = arith.constant 0 : index
      %114 = vector.load %arg8[%c1_63, %c0_64, %c0_65] : memref<4x32x17xf32, #tpu.memory_space<vmem>>, vector<1x32x17xf32>
      %115 = vector.shape_cast %114 : vector<1x32x17xf32> to vector<32x17xf32>
      %116 = vector.extract_strided_slice %115 {offsets = [0, 0], sizes = [32, 16], strides = [1, 1]} : vector<32x17xf32> to vector<32x16xf32>
      %117 = vector.extract_strided_slice %115 {offsets = [0, 16], sizes = [32, 1], strides = [1, 1]} : vector<32x17xf32> to vector<32x1xf32>
      %118 = tpu.reciprocal %117 {approx = true} : vector<32x1xf32> -> vector<32x1xf32>
      %119 = arith.mulf %117, %118 : vector<32x1xf32>
      %cst_66 = arith.constant 2.000000e+00 : f32
      %120 = vector.broadcast %cst_66 : f32 to vector<32x1xf32>
      %121 = arith.subf %120, %119 : vector<32x1xf32>
      %122 = arith.mulf %118, %121 : vector<32x1xf32>
      %123 = vector.broadcast %122 : vector<32x1xf32> to vector<32x16xf32>
      %124 = arith.mulf %116, %123 : vector<32x16xf32>
      %c2_67 = arith.constant 2 : index
      %c0_68 = arith.constant 0 : index
      %c0_69 = arith.constant 0 : index
      %125 = vector.load %arg8[%c2_67, %c0_68, %c0_69] : memref<4x32x17xf32, #tpu.memory_space<vmem>>, vector<1x32x17xf32>
      %126 = vector.shape_cast %125 : vector<1x32x17xf32> to vector<32x17xf32>
      %127 = vector.extract_strided_slice %126 {offsets = [0, 0], sizes = [32, 16], strides = [1, 1]} : vector<32x17xf32> to vector<32x16xf32>
      %128 = vector.extract_strided_slice %126 {offsets = [0, 16], sizes = [32, 1], strides = [1, 1]} : vector<32x17xf32> to vector<32x1xf32>
      %129 = tpu.reciprocal %128 {approx = true} : vector<32x1xf32> -> vector<32x1xf32>
      %130 = arith.mulf %128, %129 : vector<32x1xf32>
      %cst_70 = arith.constant 2.000000e+00 : f32
      %131 = vector.broadcast %cst_70 : f32 to vector<32x1xf32>
      %132 = arith.subf %131, %130 : vector<32x1xf32>
      %133 = arith.mulf %129, %132 : vector<32x1xf32>
      %134 = vector.broadcast %133 : vector<32x1xf32> to vector<32x16xf32>
      %135 = arith.mulf %127, %134 : vector<32x16xf32>
      %c3_71 = arith.constant 3 : index
      %c0_72 = arith.constant 0 : index
      %c0_73 = arith.constant 0 : index
      %136 = vector.load %arg8[%c3_71, %c0_72, %c0_73] : memref<4x32x17xf32, #tpu.memory_space<vmem>>, vector<1x32x17xf32>
      %137 = vector.shape_cast %136 : vector<1x32x17xf32> to vector<32x17xf32>
      %138 = vector.extract_strided_slice %137 {offsets = [0, 0], sizes = [32, 16], strides = [1, 1]} : vector<32x17xf32> to vector<32x16xf32>
      %139 = vector.extract_strided_slice %137 {offsets = [0, 16], sizes = [32, 1], strides = [1, 1]} : vector<32x17xf32> to vector<32x1xf32>
      %140 = tpu.reciprocal %139 {approx = true} : vector<32x1xf32> -> vector<32x1xf32>
      %141 = arith.mulf %139, %140 : vector<32x1xf32>
      %cst_74 = arith.constant 2.000000e+00 : f32
      %142 = vector.broadcast %cst_74 : f32 to vector<32x1xf32>
      %143 = arith.subf %142, %141 : vector<32x1xf32>
      %144 = arith.mulf %140, %143 : vector<32x1xf32>
      %145 = vector.broadcast %144 : vector<32x1xf32> to vector<32x16xf32>
      %146 = arith.mulf %138, %145 : vector<32x16xf32>
      %cst_75 = arith.constant 0.000000e+00 : f32
      %147 = vector.broadcast %cst_75 : f32 to vector<32x64xf32>
      %148 = tpu.concatenate %113, %124, %135, %146, %147 in 1 : vector<32x16xf32>, vector<32x16xf32>, vector<32x16xf32>, vector<32x16xf32>, vector<32x64xf32> -> vector<32x128xf32>
      %c0_76 = arith.constant 0 : index
      %c0_77 = arith.constant 0 : index
      %149 = vector.load %arg7[%c0_76, %c0_77] : memref<32x128xf32, #tpu.memory_space<vmem>>, vector<32x128xf32>
      tpu.vector_store %arg7[%c0_76, %c0_77], %148 {strides = array<i32>} : memref<32x128xf32, #tpu.memory_space<vmem>>, vector<32x128xf32>,
    } else {
    }
    return
  }
  func.func @transform_0(%arg0: i32, %arg1: i32) -> (i32, i32, i32) {
    %c0_i32 = arith.constant 0 : i32
    %c0_i32_0 = arith.constant 0 : i32
    %c0_i32_1 = arith.constant 0 : i32
    return %c0_i32, %arg1, %c0_i32_0 : i32, i32, i32
  }
  func.func @transform_1(%arg0: i32, %arg1: i32) -> (i32, i32) {
    %c0_i32 = arith.constant 0 : i32
    %c0_i32_0 = arith.constant 0 : i32
    return %c0_i32, %arg1 : i32, i32
  }
  func.func @transform_2(%arg0: i32, %arg1: i32) -> (i32, i32) {
    %c0_i32 = arith.constant 0 : i32
    %c0_i32_0 = arith.constant 0 : i32
    return %arg0, %c0_i32 : i32, i32
  }
  func.func @transform_3(%arg0: i32, %arg1: i32) -> (i32, i32) {
    %c0_i32 = arith.constant 0 : i32
    return %arg0, %arg1 : i32, i32
  }
  func.func @transform_4(%arg0: i32, %arg1: i32) -> (i32, i32) {
    %c0_i32 = arith.constant 0 : i32
    %c0_i32_0 = arith.constant 0 : i32
    return %arg0, %c0_i32 : i32, i32
  }
  func.func @transform_5(%arg0: i32, %arg1: i32) -> (i32, i32) {
    %c0_i32 = arith.constant 0 : i32
    %c0_i32_0 = arith.constant 0 : i32
    return %arg0, %c0_i32 : i32, i32
  }
}

</mosaic_0001>

<bundles_post_ra>
// kernel: tpu_custom_call.1
= control target key start
LH: loop header
LB: loop body
LE: loop exit
PB: predicated region body
PF: predicated region fallthrough
CT: control target
= control target key end

     0   :  { %s1147_s18 = sld [smem:[#allocation0]]   ;;  %s1631_s0 = inlined_call_operand.vmem [shape: f32[4,128,17], index: 0, kind: input, shape index: {}]   ;;  %s1632_s1 = inlined_call_operand.vmem [shape: f32[4,128], index: 1, kind: input, shape index: {}]   ;;  %s1633_s2 = inlined_call_operand.vmem [shape: f32[32,8], index: 2, kind: input, shape index: {}]   ;;  %s1634_s3 = inlined_call_operand.vmem [shape: s8[32,128], index: 3, kind: input, shape index: {}]   ;;  %s1635_s4 = inlined_call_operand.vmem [shape: f32[32,64], index: 4, kind: input, shape index: {}]   ;;  %s1636_s5 = inlined_call_operand.hbm [shape: f32[32,128], index: 5, kind: output, shape index: {}]  }
   0x1   :  { %v1101_v0 = vmov 2   ;;  %v1102_v1 = vmov 1   ;;  %v1103_v2 = vmov 7  }
   0x2   :  { %975 = vset.pattern.permute.xlu0 %v1101_v0  ;;  %977 = vset.pattern.permute.xlu1 %v1102_v1 }
   0x3   :  { %979 = vset.pattern.permute.xlu2 %v1103_v2 }
   0x6   :  { %s905_s19 = sshll.u32 %s1147_s18, 2 }
   0x7   :  { %p52_p0 = scmp.lt.s32.totalorder %s905_s19, 3 }
   0x9   :  { %s1646_s19 = smov (!%p52_p0, %s905_s19), 3 }
   0xa   :  { %10 = vsyncpa [#allocation4], 0  ;;  %s906_s20 = sshll.u32 %s1646_s19, 3  ;;  %v1104_v4 = vmov 6   ;;  %v1105_v5 = vmov 3   ;;  %v1106_v7 = vmov 5  }
   0xb   :  { %s55_s22 = scalar_lea.vmem %s1633_s2, %s906_s20  ;;  %v1107_v10 = vmov 0   ;;  %v923_v11 = vld [vmem:[%s1631_s0 + $0xf8] sm:$0xff]  ;;  %v922_v12 = vld [vmem:[%s1631_s0 + $0xf0] sm:$0xff]  ;;  %v921_v14 = vld [vmem:[%s1631_s0 + $0xe8] sm:$0xff]  ;;  %v1108_v25 = vmov 4   ;;  %vm74_vm9 = vcmask 138240  }
   0xc   :  { %v1154_v3 = vld [vmem:[%s55_s22] sm:$0xff]  ;;  %v1161_v6 = vld [vmem:[%s55_s22 + $0x8] sm:$0xff]  ;;  %v1171_v8 = vld [vmem:[%s55_s22 + $0x10] sm:$0xff]  ;;  %334 = vmatpush.msra.mxu1 %v923_v11  ;;  %s1112_s26 = smov 48   ;;  %s1113_s27 = smov 32   ;;  %vm840_vm10 = vcmask 130048  }
   0xd   :  { %252 = vperm.xlu1 %977, %v1154_v3   ;;  %373 = vperm.xlu0 %975, %v1154_v3   ;;  %v1173_v9 = vld [vmem:[%s55_s22 + $0x18] sm:$0xff]  ;;  %v938_v15 = vld [vmem:[%s1631_s0 + $0x170] sm:$0xff]  ;;  %v920_v16 = vld [vmem:[%s1631_s0 + $0xe0] sm:$0xff]  ;;  %vm845_vm11 = vcmask 261120   ;;  %vm850_vm12 = vcmask 392192   ;;  %vm855_vm13 = vcmask 523264  }
   0xe   :  { %523 = vperm.xlu2 %979, %v1154_v3   ;;  %v939_v13 = vld [vmem:[%s1631_s0 + $0x178] sm:$0xff]  ;;  %335 = vmatpush.msra.mxu1 %v922_v12  ;;  %v937_v17 = vld [vmem:[%s1631_s0 + $0x168] sm:$0xff]  ;;  %v936_v20 = vld [vmem:[%s1631_s0 + $0x160] sm:$0xff]  ;;  %s958_s28 = sshll.u32 %s1147_s18, 5  ;;  %s1114_s6 = smov [#allocation3]  }
   0xf   :  { %455 = vmatpush.msra.mxu2 %v939_v13  ;;  %v919_v18 = vld [vmem:[%s1631_s0 + $0xd8] sm:$0xff]  ;;  %v918_v21 = vld [vmem:[%s1631_s0 + $0xd0] sm:$0xff]  ;;  %v917_v24 = vld [vmem:[%s1631_s0 + $0xc8] sm:$0xff]  ;;  %s870_s30 = scalar_lea.hbm %s1636_s5, %s958_s28  ;;  %s871_s7 = sshll.u32 %s1114_s6, 4  ;;  %s872_s7 = int_to_ptr.vmem [resolvable:$true] %s871_s7 }
  0x10   :  { %336 = vmatpush.msra.mxu1 %v921_v14  ;;  %v955_v19 = vld [vmem:[%s1631_s0 + $0x1f8] sm:$0xff]  ;;  %v954_v22 = vld [vmem:[%s1631_s0 + $0x1f0] sm:$0xff]  ;;  %v953_v27 = vld [vmem:[%s1631_s0 + $0x1e8] sm:$0xff]  ;;  %s873_s18 = sshll.u32 %s870_s30, 4  ;;  %s1091_s12 = scalar_lea.hbm %s1636_s5, 32  ;;  %s874_s18 = int_to_ptr.hbm [resolvable:$true] %s873_s18 }
  0x11   :  { %456 = vmatpush.msra.mxu2 %v938_v15  ;;  %576 = vmatpush.msra.mxu3 %v955_v19  ;;  %v935_v23 = vld [vmem:[%s1631_s0 + $0x158] sm:$0xff]  ;;  %v934_v26 = vld [vmem:[%s1631_s0 + $0x150] sm:$0xff]  ;;  %v916_v28 = vld [vmem:[%s1631_s0 + $0xc0] sm:$0xff]  ;;  %s1087_s8 = sshra.s32 %s874_s18, 4  ;;  %s1088_s8 = int_to_ptr.hbm [resolvable:$true] %s1087_s8 }
  0x12   :  { %337 = vmatpush.msra.mxu1 %v920_v16  ;;  %v933_v29 = vld [vmem:[%s1631_s0 + $0x148] sm:$0xff]  ;;  %v952_v30 = vld [vmem:[%s1631_s0 + $0x1e0] sm:$0xff]  ;;  %v915_v31 = vld [vmem:[%s1631_s0 + $0xb8] sm:$0xff]  ;;  %s1089_s9 = scalar_lea.hbm %s1088_s8, 32 }
  0x13   :  { %457 = vmatpush.msra.mxu2 %v937_v17  ;;  %577 = vmatpush.msra.mxu3 %v954_v22  ;;  %v932_v32 = vld [vmem:[%s1631_s0 + $0x140] sm:$0xff]  ;;  %v951_v33 = vld [vmem:[%s1631_s0 + $0x1d8] sm:$0xff]  ;;  %v914_v34 = vld [vmem:[%s1631_s0 + $0xb0] sm:$0xff]  ;;  %p1090_p1 = scmp.ne.s32.totalorder %s1088_s8, %s1089_s9  ;;  %p1093_p2 = scmp.lt.s32.totalorder %s1091_s12, %s1089_s9 }
  0x14   :  { %338 = vmatpush.msra.mxu1 %v919_v18  ;;  %v931_v35 = vld [vmem:[%s1631_s0 + $0x138] sm:$0xff]  ;;  %v950_v36 = vld [vmem:[%s1631_s0 + $0x1d0] sm:$0xff]  ;;  %v91_v37 = vld [vmem:[%s1634_s3] sm:$0xff] }
  0x15   :  { %978 = vset.pattern.permute.xlu1 %v1104_v4  ;;  %976 = vset.pattern.permute.xlu0 %v1105_v5  ;;  %v913_v38 = vld [vmem:[%s1631_s0 + $0xa8] sm:$0xff]  ;;  %v930_v39 = vld [vmem:[%s1631_s0 + $0x130] sm:$0xff]  ;;  %v912_v41 = vld [vmem:[%s1631_s0 + $0xa0] sm:$0xff]  ;;  %vm92_vm0 = vnez %v91_v37  ;;  %p1095_p3 = pnand %p1093_p2, %p1090_p1 }
  0x16   :  { %402 = vperm.xlu1 %978, %v1154_v3   ;;  %494 = vperm.xlu0 %976, %v1154_v3   ;;  %v949_v40 = vld [vmem:[%s1631_s0 + $0x1c8] sm:$0xff]  ;;  %v948_v44 = vld [vmem:[%s1631_s0 + $0x1c0] sm:$0xff]  ;;  %v911_v45 = vld [vmem:[%s1631_s0 + $0x98] sm:$0xff]  ;;  %v1304_v48 = vsel %vm92_vm0, 16843009, %v1107_v10 }
  0x17   :  { %980 = vset.pattern.permute.xlu2 %v1101_v0  ;;  %458 = vmatpush.msra.mxu2 %v936_v20  ;;  %v929_v43 = vld [vmem:[%s1631_s0 + $0x128] sm:$0xff]  ;;  %v928_v46 = vld [vmem:[%s1631_s0 + $0x120] sm:$0xff]  ;;  %v947_v47 = vld [vmem:[%s1631_s0 + $0x1b8] sm:$0xff]  ;;  %v152_v53 = vunpack.c.0.s8 %v1304_v48  ;;  %v153_v13 = vunpack.c.1.s8 %v1304_v48 }
  0x18   :  { %377 = vperm.xlu2 %980, %v1161_v6   ;;  %339 = vmatpush.msra.mxu1 %v918_v21  ;;  %v910_v49 = vld [vmem:[%s1631_s0 + $0x90] sm:$0xff]  ;;  %v927_v50 = vld [vmem:[%s1631_s0 + $0x118] sm:$0xff]  ;;  %v909_v52 = vld [vmem:[%s1631_s0 + $0x88] sm:$0xff] }
  0x19   :  { %459 = vmatpush.msra.mxu2 %v935_v23  ;;  %578 = vmatpush.msra.mxu3 %v953_v27  ;;  %v946_v51 = vld [vmem:[%s1631_s0 + $0x1b0] sm:$0xff]  ;;  %v945_v55 = vld [vmem:[%s1631_s0 + $0x1a8] sm:$0xff]  ;;  %v908_v56 = vld [vmem:[%s1631_s0 + $0x80] sm:$0xff]  ;;  %v156_v60 = vpack.c.b16 %v152_v53, %v152_v53  ;;  %v158_v20 = vpack.c.b16 %v153_v13, %v153_v13 }
  0x1a   :  { %340 = vmatpush.msra.mxu1 %v917_v24  ;;  %v926_v54 = vld [vmem:[%s1631_s0 + $0x110] sm:$0xff]  ;;  %v925_v57 = vld [vmem:[%s1631_s0 + $0x108] sm:$0xff]  ;;  %v944_v58 = vld [vmem:[%s1631_s0 + $0x1a0] sm:$0xff] }
  0x1b   :  { %460 = vmatpush.msra.mxu2 %v934_v26  ;;  %579 = vmatpush.msra.mxu3 %v952_v30  ;;  %v924_v61 = vld [vmem:[%s1631_s0 + $0x100] sm:$0xff]  ;;  %v943_v62 = vld [vmem:[%s1631_s0 + $0x198] sm:$0xff]  ;;  %v942_v63 = vld [vmem:[%s1631_s0 + $0x190] sm:$0xff] }
  0x1c   :  { %341 = vmatpush.msra.mxu1 %v916_v28  ;;  %v1374_v19 = vld [vmem:[%s1632_s1 + $0x3] ss:$0 sm:$0xff] }
  0x1d   :  { %461 = vmatpush.msra.mxu2 %v933_v29  ;;  %580 = vmatpush.msra.mxu3 %v951_v33  ;;  %v159_v29 = vpack.c.b8 %v158_v20, %v158_v20 }
  0x1e   :  { %981 = vset.pattern.permute.xlu1 %v1105_v5  ;;  %983 = vset.pattern.permute.xlu0 %v1102_v1 }
  0x1f   :  { %498 = vperm.xlu1 %981, %v1161_v6   ;;  %256 = vperm.xlu0 %983, %v1161_v6   ;;  %vm165_vm3 = vnez %v159_v29 }
  0x20   :  { %982 = vset.pattern.permute.xlu2 %v1106_v7  ;;  %342 = vmatpush.msra.mxu1 %v915_v31 }
  0x21   :  { %281 = vperm.xlu2 %982, %v1154_v3   ;;  %462 = vmatpush.msra.mxu2 %v932_v32 }
  0x22   :  { %343 = vmatpush.msra.mxu1 %v914_v34  ;;  %581 = vmatpush.msra.mxu3 %v950_v36  ;;  %v169_v36 = vsel %vm165_vm3, 16843009, %v1107_v10 }
  0x23   :  { %463 = vmatpush.msra.mxu2 %v931_v35 }
  0x24   :  { %344 = vmatpush.msra.mxu1 %v913_v38  ;;  %582 = vmatpush.msra.mxu3 %v949_v40 }
  0x25   :  { %464 = vmatpush.msra.mxu2 %v930_v39 }
  0x26   :  { %345 = vmatpush.msra.mxu1 %v912_v41  ;;  %583 = vmatpush.msra.mxu3 %v948_v44 }
  0x27   :  { %984 = vset.pattern.permute.xlu1 %v1104_v4  ;;  %988 = vset.pattern.permute.xlu0 %v1106_v7 }
  0x28   :  { %406 = vperm.xlu1 %984, %v1161_v6   ;;  %285 = vperm.xlu0 %988, %v1161_v6  }
  0x29   :  { %985 = vset.pattern.permute.xlu2 %v1103_v2  ;;  %465 = vmatpush.msra.mxu2 %v929_v43 }
  0x2a   :  { %527 = vperm.xlu2 %985, %v1161_v6   ;;  %346 = vmatpush.msra.mxu1 %v911_v45 }
  0x2b   :  { %466 = vmatpush.msra.mxu2 %v928_v46  ;;  %584 = vmatpush.msra.mxu3 %v947_v47  ;;  %v173_v46 = vunpack.c.0.s8 %v169_v36  ;;  %v154_v47 = vunpack.c.2.s8 %v1304_v48 }
  0x2c   :  { %347 = vmatpush.msra.mxu1 %v910_v49 }
  0x2d   :  { %467 = vmatpush.msra.mxu2 %v927_v50  ;;  %585 = vmatpush.msra.mxu3 %v946_v51  ;;  %vm1391_vm4 = vcmp.ne.s32.totalorder %v173_v46, 0 }
  0x2e   :  { %348 = vmatpush.msra.mxu1 %v909_v52 }
  0x2f   :  { %468 = vmatpush.msra.mxu2 %v926_v54  ;;  %586 = vmatpush.msra.mxu3 %v945_v55  ;;  %v160_v54 = vpack.c.b16 %v154_v47, %v154_v47 }
  0x30   :  { %986 = vset.pattern.permute.xlu1 %v1101_v0  ;;  %993 = vset.pattern.permute.xlu0 %v1105_v5 }
  0x31   :  { %381 = vperm.xlu1 %986, %v1171_v8   ;;  %506 = vperm.xlu0 %993, %v1173_v9  }
  0x32   :  { %987 = vset.pattern.permute.xlu2 %v1105_v5  ;;  %349 = vmatpush.msra.mxu1 %v908_v56 }
  0x33   :  { %502 = vperm.xlu2 %987, %v1171_v8   ;;  %469 = vmatpush.msra.mxu2 %v925_v57 }
  0x34   :  { %587 = vmatpush.msra.mxu3 %v944_v58 }
  0x35   :  { %470 = vmatpush.msra.mxu2 %v924_v61 }
  0x36   :  { %588 = vmatpush.msra.mxu3 %v943_v62 }
  0x38   :  { %589 = vmatpush.msra.mxu3 %v942_v63 }
  0x39   :  { %989 = vset.pattern.permute.xlu1 %v1102_v1  ;;  %998 = vset.pattern.permute.xlu0 %v1106_v7 }
  0x3a   :  { %260 = vperm.xlu1 %989, %v1171_v8   ;;  %293 = vperm.xlu0 %998, %v1173_v9  }
  0x3b   :  { %990 = vset.pattern.permute.xlu2 %v1104_v4 }
  0x3c   :  { %410 = vperm.xlu2 %990, %v1171_v8  }
  0x42   :  { %991 = vset.pattern.permute.xlu1 %v1103_v2  ;;  %1001 = vset.pattern.permute.xlu0 %v1107_v10 }
  0x43   :  { %531 = vperm.xlu1 %991, %v1171_v8   ;;  %110 = vperm.xlu0 %1001, %v1171_v8  }
  0x44   :  { %992 = vset.pattern.permute.xlu2 %v1101_v0  ;;  %v157_v0 = vpack.c.b8 %v156_v60, %v156_v60 }
  0x45   :  { %385 = vperm.xlu2 %992, %v1173_v9  }
  0x46   :  { %vm164_vm1 = vnez %v157_v0 }
  0x4b   :  { %994 = vset.pattern.permute.xlu1 %v1106_v7 }
  0x4c   :  { %289 = vperm.xlu1 %994, %v1171_v8  }
  0x4d   :  { %995 = vset.pattern.permute.xlu2 %v1102_v1  ;;  %v941_v1 = vld [vmem:[%s1631_s0 + $0x188] sm:$0xff] }
  0x4e   :  { %264 = vperm.xlu2 %995, %v1173_v9   ;;  %590 = vmatpush.msra.mxu3 %v941_v1  ;;  %v161_v1 = vpack.c.b8 %v160_v54, %v160_v54 }
  0x50   :  { %vm166_vm5 = vnez %v161_v1 }
  0x54   :  { %996 = vset.pattern.permute.xlu1 %v1104_v4  ;;  %v1361_v4 = vld [vmem:[%s1632_s1 + $0x1] ss:$0 sm:$0xff] }
  0x55   :  { %414 = vperm.xlu1 %996, %v1173_v9  }
  0x56   :  { %997 = vset.pattern.permute.xlu2 %v1103_v2  ;;  %v940_v2 = vld [vmem:[%s1631_s0 + $0x180] sm:$0xff] }
  0x57   :  { %535 = vperm.xlu2 %997, %v1173_v9   ;;  %591 = vmatpush.msra.mxu3 %v940_v2 }
  0x5d   :  { %999 = vset.pattern.permute.xlu1 %v1107_v10 }
  0x5e   :  { %100 = vperm.xlu1 %999, %v1154_v3  }
  0x5f   :  { %1000 = vset.pattern.permute.xlu2 %v1108_v25 }
  0x60   :  { %132 = vperm.xlu2 %1000, %v1154_v3   ;;  %v1356_v3 = vld [vmem:[%s1632_s1 + $0x2] ss:$0 sm:$0xff] }
  0x66   :  { %105 = vperm.xlu1 %999, %v1161_v6  }
  0x68   :  { %136 = vperm.xlu2 %1000, %v1161_v6   ;;  %v1286_v42 = vpop.permute.xlu2 %523  ;;  %v168_v6 = vsel %vm164_vm1, 16843009, %v1107_v10 }
  0x69   :  { %v172_v12 = vunpack.c.0.s8 %v168_v6 }
  0x6b   :  { %vm1367_vm2 = vcmp.ne.s32.totalorder %v172_v12, 0  ;;  %v170_v12 = vsel %vm166_vm5, 16843009, %v1107_v10 }
  0x6c   :  { %v174_v20 = vunpack.c.0.s8 %v170_v12 }
  0x6e   :  { %1002 = vset.pattern.permute.xlu1 %v1108_v25  ;;  %vm1415_vm6 = vcmp.ne.s32.totalorder %v174_v20, 0 }
  0x6f   :  { %140 = vperm.xlu1 %1002, %v1171_v8  }
  0x70   :  { %1003 = vset.pattern.permute.xlu2 %v1107_v10 }
  0x71   :  { %115 = vperm.xlu2 %1003, %v1173_v9  }
  0x72   :  { %v378_v59 = vpop.permute.xlu2 %377 }
  0x73   :  { %v390_v38 = vadd.f32 %v1356_v3, %v378_v59 }
  0x75   :  { %v394_v51 = vmul.f32 0.01, %v390_v38 }
  0x77   :  { %144 = vperm.xlu1 %1002, %v1173_v9   ;;  %v398_v58 = vmax.f32 %v390_v38, %v394_v51 }
  0x7b   :  { %v282_v5 = vpop.permute.xlu2 %281 }
  0x7f   :  { %v253_v7 = vpop.permute.xlu1 %252  ;;  %v374_v8 = vpop.permute.xlu0 %373 }
  0x80   :  { %v268_v9 = vadd.f32 %v1361_v4, %v253_v7  ;;  %v389_v11 = vadd.f32 %v1356_v3, %v374_v8 }
  0x82   :  { %v272_v14 = vmul.f32 0.01, %v268_v9  ;;  %v393_v15 = vmul.f32 0.01, %v389_v11 }
  0x84   :  { %v276_v16 = vmax.f32 %v268_v9, %v272_v14  ;;  %v397_v18 = vmax.f32 %v389_v11, %v393_v15  ;;  %v528_v21 = vpop.permute.xlu2 %527  ;;  %v155_v11 = vunpack.c.3.s8 %v1304_v48  ;;  %v211_v15 = vld [vmem:[%s1631_s0 + $0x78] sm:$0xff] }
  0x85   :  { %212 = vmatpush.msra.mxu0 %v211_v15 }
  0x86   :  { %v296_v22 = vsub.f32 %v276_v16, %v282_v5 }
  0x88   :  { %v300_v23 = vsel %vm1367_vm2, %v296_v22, -1e+30  ;;  %v403_v24 = vpop.permute.xlu1 %402  ;;  %v495_v25 = vpop.permute.xlu0 %494 }
  0x89   :  { %v304_v26 = vmul.f32 1.442695, %v300_v23  ;;  %v417_v27 = vsub.f32 %v397_v18, %v403_v24  ;;  %v510_v28 = vadd.f32 %v1374_v19, %v495_v25  ;;  %v210_v18 = vld [vmem:[%s1631_s0 + $0x70] sm:$0xff]  ;;  %v209_v24 = vld [vmem:[%s1631_s0 + $0x68] sm:$0xff] }
  0x8a   :  { %213 = vmatpush.msra.mxu0 %v210_v18 }
  0x8b   :  { %1011 = vpow2.f32 %v304_v26  ;;  %v421_v30 = vsel %vm1367_vm2, %v417_v27, -1e+30  ;;  %v514_v31 = vmul.f32 0.01, %v510_v28 }
  0x8c   :  { %v425_v32 = vmul.f32 1.442695, %v421_v30  ;;  %214 = vmatpush.msra.mxu0 %v209_v24  ;;  %v208_v30 = vld [vmem:[%s1631_s0 + $0x60] sm:$0xff] }
  0x8d   :  { %v518_v33 = vmax.f32 %v510_v28, %v514_v31  ;;  %v1381_v34 = vpop.permute.xlu2 %502 }
  0x8e   :  { %1013 = vpow2.f32 %v425_v32  ;;  %215 = vmatpush.msra.mxu0 %v208_v30 }
  0x8f   :  { %v538_v35 = vsub.f32 %v518_v33, %v1286_v42  ;;  %v207_v33 = vld [vmem:[%s1631_s0 + $0x58] sm:$0xff] }
  0x90   :  { %216 = vmatpush.msra.mxu0 %v207_v33 }
  0x91   :  { %v1012_v37 = vpop.eup %1011  ;;  %v542_v39 = vsel %vm1367_vm2, %v538_v35, -1e+30  ;;  %v499_v40 = vpop.permute.xlu1 %498  ;;  %v512_v35 = vadd.f32 %v1374_v19, %v1381_v34  ;;  %v204_v34 = vld [vmem:[%s1631_s0 + $0x40] sm:$0xff] }
  0x92   :  { %v257_v41 = vpop.permute.xlu0 %256  ;;  %v546_v43 = vmul.f32 1.442695, %v542_v39  ;;  %v511_v44 = vadd.f32 %v1374_v19, %v499_v40  ;;  %350 = vmatmul.f32.vlgmr.msra.gmra.mxu1 %v1012_v37  ;;  %v206_v39 = vld [vmem:[%s1631_s0 + $0x50] sm:$0xff]  ;;  %v205_v40 = vld [vmem:[%s1631_s0 + $0x48] sm:$0xff] }
  0x93   :  { %v269_v45 = vadd.f32 %v1361_v4, %v257_v41  ;;  %217 = vmatpush.msra.mxu0 %v206_v39 }
  0x94   :  { %v1014_v42 = vpop.eup %1013  ;;  %v515_v49 = vmul.f32 0.01, %v511_v44  ;;  %1015 = vpow2.f32 %v546_v43  ;;  %v516_v43 = vmul.f32 0.01, %v512_v35 }
  0x95   :  { %v273_v50 = vmul.f32 0.01, %v269_v45  ;;  %471 = vmatmul.f32.vlgmr.msra.gmra.mxu2 %v1014_v42  ;;  %218 = vmatpush.msra.mxu0 %v205_v40  ;;  %v203_v42 = vld [vmem:[%s1631_s0 + $0x38] sm:$0xff] }
  0x96   :  { %v519_v52 = vmax.f32 %v511_v44, %v515_v49  ;;  %v411_v55 = vpop.permute.xlu2 %410  ;;  %v520_v49 = vmax.f32 %v512_v35, %v516_v43 }
  0x97   :  { %v277_v56 = vmax.f32 %v269_v45, %v273_v50  ;;  %219 = vmatpush.msra.mxu0 %v204_v34 }
  0x98   :  { %v539_v57 = vsub.f32 %v519_v52, %v528_v21  ;;  %v162_v21 = vpack.c.b16 %v155_v11, %v155_v11  ;;  %v202_v52 = vld [vmem:[%s1631_s0 + $0x30] sm:$0xff] }
  0x99   :  { %220 = vmatpush.msra.mxu0 %v203_v42 }
  0x9a   :  { %v1016_v59 = vpop.eup %1015  ;;  %v543_v60 = vsel %vm1391_vm4, %v539_v57, -1e+30  ;;  %v407_v61 = vpop.permute.xlu1 %406  ;;  %v163_v29 = vpack.c.b8 %v162_v21, %v162_v21 }
  0x9b   :  { %v286_v62 = vpop.permute.xlu0 %285  ;;  %v548_v63 = vmul.f32 1.442695, %v543_v60  ;;  %v418_v0 = vsub.f32 %v398_v58, %v407_v61  ;;  %592 = vmatmul.f32.vlgmr.msra.gmra.mxu3 %v1016_v59  ;;  %221 = vmatpush.msra.mxu0 %v202_v52  ;;  %v201_v58 = vld [vmem:[%s1631_s0 + $0x28] sm:$0xff]  ;;  %v200_v61 = vld [vmem:[%s1631_s0 + $0x20] sm:$0xff] }
  0x9c   :  { %v297_v2 = vsub.f32 %v277_v56, %v286_v62  ;;  %vm167_vm7 = vnez %v163_v29  ;;  %v1010_v29 = vld [vmem:[%s1632_s1] ss:$0 sm:$0xff]  ;;  %s1111_s1 = smov 16  }
  0x9d   :  { %1017 = vpow2.f32 %v548_v63  ;;  %v422_v5 = vsel %vm1391_vm4, %v418_v0, -1e+30  ;;  %222 = vmatpush.msra.mxu0 %v201_v58  ;;  %v199_v0 = vld [vmem:[%s1631_s0 + $0x18] sm:$0xff] }
  0x9e   :  { %v301_v6 = vsel %vm1391_vm4, %v297_v2, -1e+30  ;;  %v427_v7 = vmul.f32 1.442695, %v422_v5 }
  0x9f   :  { %v306_v8 = vmul.f32 1.442695, %v301_v6  ;;  %v1401_v9 = vpop.permute.xlu2 %385  ;;  %223 = vmatpush.msra.mxu0 %v200_v61  ;;  %v198_v6 = vld [vmem:[%s1631_s0 + $0x10] sm:$0xff] }
  0xa0   :  { %1019 = vpow2.f32 %v427_v7  ;;  %v392_v7 = vadd.f32 %v1356_v3, %v1401_v9 }
  0xa1   :  { %1021 = vpow2.f32 %v306_v8  ;;  %224 = vmatpush.msra.mxu0 %v199_v0 }
  0xa2   :  { %v396_v18 = vmul.f32 0.01, %v392_v7 }
  0xa3   :  { %v1018_v13 = vpop.eup %1017  ;;  %v382_v14 = vpop.permute.xlu1 %381  ;;  %225 = vmatpush.msra.mxu0 %v198_v6 }
  0xa4   :  { %v391_v16 = vadd.f32 %v1356_v3, %v382_v14  ;;  %595 = vmatmul.f32.gmra.mxu3 %v1018_v13  ;;  %v507_v28 = vpop.permute.xlu0 %506  ;;  %v197_v13 = vld [vmem:[%s1631_s0 + $0x8] sm:$0xff]  ;;  %v400_v21 = vmax.f32 %v392_v7, %v396_v18 }
  0xa5   :  { %v513_v32 = vadd.f32 %v1374_v19, %v507_v28  ;;  %v171_v19 = vsel %vm167_vm7, 16843009, %v1107_v10  ;;  %226 = vmatpush.msra.mxu0 %v197_v13 }
  0xa6   :  { %v1020_v22 = vpop.eup %1019  ;;  %v395_v48 = vmul.f32 0.01, %v391_v16  ;;  %v175_v46 = vunpack.c.0.s8 %v171_v19 }
  0xa7   :  { %v1022_v23 = vpop.eup %1021  ;;  %474 = vmatmul.f32.gmra.mxu2 %v1020_v22  ;;  %v517_v41 = vmul.f32 0.01, %v513_v32 }
  0xa8   :  { %v399_v25 = vmax.f32 %v391_v16, %v395_v48  ;;  %353 = vmatmul.f32.gmra.mxu1 %v1022_v23  ;;  %v265_v27 = vpop.permute.xlu2 %264  ;;  %vm1448_vm8 = vcmp.ne.s32.totalorder %v175_v46, 0  ;;  %v196_v16 = vld [vmem:[%s1631_s0] sm:$0xff] }
  0xa9   :  { %v521_v44 = vmax.f32 %v513_v32, %v517_v41  ;;  %v271_v45 = vadd.f32 %v1361_v4, %v265_v27  ;;  %227 = vmatpush.msra.mxu0 %v196_v16 }
  0xaa   :  { %v419_v31 = vsub.f32 %v399_v25, %v411_v55 }
  0xab   :  { %v275_v56 = vmul.f32 0.01, %v271_v45 }
  0xac   :  { %v423_v36 = vsel %vm1415_vm6, %v419_v31, -1e+30  ;;  %v261_v37 = vpop.permute.xlu1 %260  ;;  %v294_v1 = vpop.permute.xlu0 %293 }
  0xad   :  { %v429_v38 = vmul.f32 1.442695, %v423_v36  ;;  %v270_v10 = vadd.f32 %v1361_v4, %v261_v37  ;;  %v279_v63 = vmax.f32 %v271_v45, %v275_v56 }
  0xaf   :  { %1023 = vpow2.f32 %v429_v38  ;;  %v274_v59 = vmul.f32 0.01, %v270_v10  ;;  %v299_v12 = vsub.f32 %v279_v63, %v294_v1  ;;  %v1110_v1 = vmov 16  }
  0xb0   :  { %1005 = vset.pattern.permute.xlu1 %v1110_v1  ;;  %1006 = vset.pattern.permute.xlu0 %v1110_v1 }
  0xb1   :  { %v536_v47 = vpop.permute.xlu2 %535  ;;  %v278_v2 = vmax.f32 %v270_v10, %v274_v59  ;;  %v303_v9 = vsel %vm1448_vm8, %v299_v12, -1e+30  ;;  %1004 = vset.pattern.permute.xlu2 %v1110_v1 }
  0xb2   :  { %v541_v55 = vsub.f32 %v521_v44, %v536_v47  ;;  %v310_v20 = vmul.f32 1.442695, %v303_v9  ;;  %v1109_v47 = vmov 0.0  }
  0xb3   :  { %79 = vst.msk [vmem:[#allocation2 + $0x20] sm:$0xff] %vm74_vm9, %v1109_v47 }
  0xb4   :  { %v545_v62 = vsel %vm1448_vm8, %v541_v55, -1e+30  ;;  %75 = vst.msk [vmem:[#allocation2] sm:$0xff] %vm74_vm9, %v1109_v47 }
  0xb5   :  { %v1024_v50 = vpop.eup %1023  ;;  %v532_v51 = vpop.permute.xlu1 %531  ;;  %v552_v5 = vmul.f32 1.442695, %v545_v62  ;;  %76 = vst.msk [vmem:[#allocation2 + $0x8] sm:$0xff] %vm74_vm9, %v1109_v47 }
  0xb6   :  { %v540_v54 = vsub.f32 %v520_v49, %v532_v51  ;;  %477 = vmatmul.f32.gmra.mxu2 %v1024_v50  ;;  %v111_v37 = vpop.permute.xlu0 %110  ;;  %77 = vst.msk [vmem:[#allocation2 + $0x10] sm:$0xff] %vm74_vm9, %v1109_v47 }
  0xb7   :  { %v121_v39 = vadd.f32 %v1010_v29, %v111_v37  ;;  %78 = vst.msk [vmem:[#allocation2 + $0x18] sm:$0xff] %vm74_vm9, %v1109_v47 }
  0xb8   :  { %v544_v4 = vsel %vm1415_vm6, %v540_v54, -1e+30  ;;  %80 = vst.msk [vmem:[#allocation2 + $0x28] sm:$0xff] %vm74_vm9, %v1109_v47 }
  0xb9   :  { %v550_v60 = vmul.f32 1.442695, %v544_v4  ;;  %v125_v44 = vmul.f32 0.01, %v121_v39  ;;  %81 = vst.msk [vmem:[#allocation2 + $0x30] sm:$0xff] %vm74_vm9, %v1109_v47 }
  0xba   :  { %v133_v24 = vpop.permute.xlu2 %132  ;;  %82 = vst.msk [vmem:[#allocation2 + $0x38] sm:$0xff] %vm74_vm9, %v1109_v47 }
  0xbb   :  { %1025 = vpow2.f32 %v550_v60  ;;  %v129_v49 = vmax.f32 %v121_v39, %v125_v44  ;;  %83 = vst.msk [vmem:[#allocation2 + $0x40] sm:$0xff] %vm74_vm9, %v1109_v47 }
  0xbc   :  { %1027 = vpow2.f32 %v552_v5  ;;  %84 = vst.msk [vmem:[#allocation2 + $0x48] sm:$0xff] %vm74_vm9, %v1109_v47 }
  0xbd   :  { %85 = vst.msk [vmem:[#allocation2 + $0x50] sm:$0xff] %vm74_vm9, %v1109_v47 }
  0xbe   :  { %v290_v8 = vpop.permute.xlu1 %289  ;;  %86 = vst.msk [vmem:[#allocation2 + $0x58] sm:$0xff] %vm74_vm9, %v1109_v47 }
  0xbf   :  { %v298_v11 = vsub.f32 %v278_v2, %v290_v8  ;;  %87 = vst.msk [vmem:[#allocation2 + $0x60] sm:$0xff] %vm74_vm9, %v1109_v47  ;;  %v313_v2 = vld [vmem:[#allocation2 + $0x20] sm:$0xff] }
  0xc0   :  { %88 = vst.msk [vmem:[#allocation2 + $0x68] sm:$0xff] %vm74_vm9, %v1109_v47 }
  0xc1   :  { %v1026_v14 = vpop.eup %1025  ;;  %v302_v15 = vsel %vm1415_vm6, %v298_v11, -1e+30  ;;  %89 = vst.msk [vmem:[#allocation2 + $0x70] sm:$0xff] %vm74_vm9, %v1109_v47  ;;  %v316_v44 = vld [vmem:[#allocation2 + $0x38] sm:$0xff] }
  0xc2   :  { %v308_v3 = vmul.f32 1.442695, %v302_v15  ;;  %598 = vmatmul.f32.gmra.mxu3 %v1026_v14  ;;  %v1028_v22 = vpop.eup %1027  ;;  %v137_v36 = vpop.permute.xlu2 %136  ;;  %90 = vst.msk [vmem:[#allocation2 + $0x78] sm:$0xff] %vm74_vm9, %v1109_v47  ;;  %v434_v7 = vld [vmem:[#allocation2 + $0x40] sm:$0xff] }
  0xc4   :  { %1029 = vpow2.f32 %v308_v3  ;;  %v314_v3 = vld [vmem:[#allocation2 + $0x28] sm:$0xff] }
  0xc5   :  { %1031 = vpow2.f32 %v310_v20 }
  0xc6   :  { %v555_v12 = vld [vmem:[#allocation2 + $0x60] sm:$0xff] }
  0xc7   :  { %v415_v48 = vpop.permute.xlu1 %414  ;;  %v556_v20 = vld [vmem:[#allocation2 + $0x68] sm:$0xff] }
  0xc8   :  { %v420_v23 = vsub.f32 %v400_v21, %v415_v48  ;;  %v557_v37 = vld [vmem:[#allocation2 + $0x70] sm:$0xff] }
  0xca   :  { %v1030_v25 = vpop.eup %1029  ;;  %v424_v27 = vsel %vm1448_vm8, %v420_v23, -1e+30  ;;  %601 = vmatmul.f32.gmra.mxu3 %v1028_v22 }
  0xcb   :  { %v431_v28 = vmul.f32 1.442695, %v424_v27  ;;  %356 = vmatmul.f32.gmra.mxu1 %v1030_v25  ;;  %v1032_v30 = vpop.eup %1031  ;;  %v116_v46 = vpop.permute.xlu2 %115 }
  0xcc   :  { %v122_v50 = vadd.f32 %v1010_v29, %v116_v46 }
  0xcd   :  { %1033 = vpow2.f32 %v431_v28 }
  0xce   :  { %v126_v56 = vmul.f32 0.01, %v122_v50 }
  0xd0   :  { %v101_v31 = vpop.permute.xlu1 %100  ;;  %v130_v53 = vmax.f32 %v122_v50, %v126_v56 }
  0xd1   :  { %v119_v32 = vadd.f32 %v1010_v29, %v101_v31 }
  0xd3   :  { %v1034_v33 = vpop.eup %1033  ;;  %v123_v35 = vmul.f32 0.01, %v119_v32  ;;  %359 = vmatmul.f32.gmra.mxu1 %v1032_v30 }
  0xd4   :  { %480 = vmatmul.f32.gmra.mxu2 %v1034_v33  ;;  %v436_v33 = vld [vmem:[#allocation2 + $0x50] sm:$0xff] }
  0xd5   :  { %v127_v38 = vmax.f32 %v119_v32, %v123_v35 }
  0xd7   :  { %v147_v40 = vsub.f32 %v127_v38, %v133_v24  ;;  %v435_v24 = vld [vmem:[#allocation2 + $0x48] sm:$0xff] }
  0xd8   :  { %v106_v41 = vpop.permute.xlu1 %105 }
  0xd9   :  { %v180_v43 = vsel %vm1367_vm2, %v147_v40, -1e+30  ;;  %v120_v19 = vadd.f32 %v1010_v29, %v106_v41  ;;  %v315_v40 = vld [vmem:[#allocation2 + $0x30] sm:$0xff] }
  0xda   :  { %v184_v34 = vmul.f32 1.442695, %v180_v43 }
  0xdb   :  { %v124_v45 = vmul.f32 0.01, %v120_v19 }
  0xdc   :  { %1035 = vpow2.f32 %v184_v34 }
  0xdd   :  { %v128_v42 = vmax.f32 %v120_v19, %v124_v45  ;;  %v558_v19 = vld [vmem:[#allocation2 + $0x78] sm:$0xff] }
  0xdf   :  { %v148_v10 = vsub.f32 %v128_v42, %v137_v36  ;;  %v437_v42 = vld [vmem:[#allocation2 + $0x58] sm:$0xff] }
  0xe1   :  { %v181_v17 = vsel %vm1391_vm4, %v148_v10, -1e+30  ;;  %v141_v51 = vpop.permute.xlu1 %140  ;;  %v192_v10 = vld [vmem:[#allocation2] sm:$0xff] }
  0xe2   :  { %v1036_v52 = vpop.eup %1035  ;;  %v186_v54 = vmul.f32 1.442695, %v181_v17  ;;  %v149_v55 = vsub.f32 %v129_v49, %v141_v51 }
  0xe3   :  { %228 = vmatmul.f32.vlgmr.msra.gmra.mxu0 %v1036_v52  ;;  %v193_v52 = vld [vmem:[#allocation2 + $0x8] sm:$0xff] }
  0xe4   :  { %1037 = vpow2.f32 %v186_v54  ;;  %v182_v58 = vsel %vm1415_vm6, %v149_v55, -1e+30 }
  0xe5   :  { %v188_v4 = vmul.f32 1.442695, %v182_v58 }
  0xe7   :  { %1039 = vpow2.f32 %v188_v4 }
  0xe9   :  { %v145_v59 = vpop.permute.xlu1 %144 }
  0xea   :  { %v1038_v60 = vpop.eup %1037  ;;  %v150_v61 = vsub.f32 %v130_v53, %v145_v59  ;;  %v194_v53 = vld [vmem:[#allocation2 + $0x10] sm:$0xff] }
  0xeb   :  { %231 = vmatmul.f32.gmra.mxu0 %v1038_v60 }
  0xec   :  { %v183_v26 = vsel %vm1448_vm8, %v150_v61, -1e+30 }
  0xed   :  { %v190_v62 = vmul.f32 1.442695, %v183_v26  ;;  %v1040_v63 = vpop.eup %1039 }
  0xef   :  { %1041 = vpow2.f32 %v190_v62 }
  0xf3   :  { %234 = vmatmul.f32.gmra.mxu0 %v1040_v63 }
  0xf5   :  { %v1042_v0 = vpop.eup %1041 }
  0xfb   :  { %237 = vmatmul.f32.gmra.mxu0 %v1042_v0 }
 0x10f   :  { %v351_v5 = vpop.f32.mrf.mxu1 }
 0x110   :  { %v363_v6 = vadd.f32 %v351_v5, %v313_v2  ;;  %v195_v5 = vld [vmem:[#allocation2 + $0x18] sm:$0xff] }
 0x112   :  { %367 = vst.msk [vmem:[#allocation2 + $0x20] sm:$0xff] %vm74_vm9, %v363_v6 }
 0x118   :  { %v472_v8 = vpop.f32.mrf.mxu2 }
 0x119   :  { %v484_v11 = vadd.f32 %v472_v8, %v434_v7  ;;  %v1510_v57 = vld [vmem:[#allocation2 + $0x20] sm:$0xff] }
 0x11a   :  { %1043 = vrcp.f32 %v1510_v57 }
 0x11b   :  { %488 = vst.msk [vmem:[#allocation2 + $0x40] sm:$0xff] %vm74_vm9, %v484_v11 }
 0x11e   :  { %v593_v13 = vpop.f32.mrf.mxu3 }
 0x11f   :  { %v605_v14 = vadd.f32 %v593_v13, %v555_v12 }
 0x120   :  { %v1044_v15 = vpop.eup %1043 }
 0x121   :  { %609 = vst.msk [vmem:[#allocation2 + $0x60] sm:$0xff] %vm74_vm9, %v605_v14  ;;  %v668_v16 = vmul.f32 %v1044_v15, %v1510_v57 }
 0x122   :  { %v1532_v58 = vld [vmem:[#allocation2 + $0x40] sm:$0xff] }
 0x123   :  { %v672_v18 = vsub.f32 2.0, %v668_v16 }
 0x125   :  { %v676_v9 = vmul.f32 %v1044_v15, %v672_v18  ;;  %v354_v21 = vpop.f32.mrf.mxu1 }
 0x126   :  { %v364_v22 = vadd.f32 %v354_v21, %v314_v3 }
 0x127   :  { %682 = vperm.xlu1 %1005, %v676_v9   ;;  %v596_v48 = vpop.f32.mrf.mxu3 }
 0x128   :  { %v606_v23 = vadd.f32 %v596_v48, %v556_v20  ;;  %v1516_v25 = vld [vmem:[#allocation2 + $0x60] sm:$0xff]  ;;  %368 = vst.msk [vmem:[#allocation2 + $0x28] sm:$0xff] %vm74_vm9, %v364_v22 }
 0x129   :  { %1045 = vrcp.f32 %v1516_v25 }
 0x12a   :  { %610 = vst.msk [vmem:[#allocation2 + $0x68] sm:$0xff] %vm74_vm9, %v606_v23  ;;  %v475_v27 = vpop.f32.mrf.mxu2 }
 0x12b   :  { %v485_v28 = vadd.f32 %v475_v27, %v435_v24 }
 0x12d   :  { %489 = vst.msk [vmem:[#allocation2 + $0x48] sm:$0xff] %vm74_vm9, %v485_v28 }
 0x12f   :  { %v1046_v29 = vpop.eup %1045  ;;  %v1537_v61 = vld [vmem:[#allocation2 + $0x28] sm:$0xff] }
 0x130   :  { %v756_v30 = vmul.f32 %v1046_v29, %v1516_v25 }
 0x132   :  { %v760_v31 = vsub.f32 2.0, %v756_v30 }
 0x134   :  { %v764_v32 = vmul.f32 %v1046_v29, %v760_v31  ;;  %v1542_v63 = vld [vmem:[#allocation2 + $0x48] sm:$0xff] }
 0x136   :  { %770 = vperm.xlu0 %1006, %v764_v32  }
 0x139   :  { %v478_v35 = vpop.f32.mrf.mxu2 }
 0x13a   :  { %v486_v36 = vadd.f32 %v478_v35, %v436_v33 }
 0x13c   :  { %490 = vst.msk [vmem:[#allocation2 + $0x50] sm:$0xff] %vm74_vm9, %v486_v36 }
 0x143   :  { %v1556_v3 = vld [vmem:[#allocation2 + $0x50] sm:$0xff] }
 0x145   :  { %v599_v38 = vpop.f32.mrf.mxu3 }
 0x146   :  { %v607_v39 = vadd.f32 %v599_v38, %v557_v37 }
 0x148   :  { %611 = vst.msk [vmem:[#allocation2 + $0x70] sm:$0xff] %vm74_vm9, %v607_v39  ;;  %v357_v41 = vpop.f32.mrf.mxu1 }
 0x149   :  { %v365_v43 = vadd.f32 %v357_v41, %v315_v40 }
 0x14b   :  { %369 = vst.msk [vmem:[#allocation2 + $0x30] sm:$0xff] %vm74_vm9, %v365_v43 }
 0x14d   :  { %v602_v34 = vpop.f32.mrf.mxu3 }
 0x14e   :  { %v608_v45 = vadd.f32 %v602_v34, %v558_v19  ;;  %v1577_v19 = vld [vmem:[#allocation2 + $0x68] sm:$0xff] }
 0x150   :  { %v360_v46 = vpop.f32.mrf.mxu1  ;;  %612 = vst.msk [vmem:[#allocation2 + $0x78] sm:$0xff] %vm74_vm9, %v608_v45 }
 0x151   :  { %v366_v47 = vadd.f32 %v360_v46, %v316_v44  ;;  %v750_v46 = vld [vmem:[#allocation2 + $0x70] sm:$0xff] }
 0x152   :  { %v1552_v16 = vld [vmem:[#allocation2 + $0x30] sm:$0xff] }
 0x153   :  { %370 = vst.msk [vmem:[#allocation2 + $0x38] sm:$0xff] %vm74_vm9, %v366_v47 }
 0x157   :  { %v481_v49 = vpop.f32.mrf.mxu2  ;;  %v1562_v27 = vld [vmem:[#allocation2 + $0x78] sm:$0xff] }
 0x158   :  { %v487_v50 = vadd.f32 %v481_v49, %v437_v42 }
 0x15a   :  { %491 = vst.msk [vmem:[#allocation2 + $0x58] sm:$0xff] %vm74_vm9, %v487_v50  ;;  %v1570_v33 = vld [vmem:[#allocation2 + $0x38] sm:$0xff] }
 0x160   :  { %v229_v17 = vpop.f32.mrf.mxu0 }
 0x161   :  { %v241_v51 = vadd.f32 %v229_v17, %v192_v10  ;;  %v1567_v31 = vld [vmem:[#allocation2 + $0x58] sm:$0xff] }
 0x163   :  { %246 = vst.msk [vmem:[#allocation2] sm:$0xff] %vm74_vm9, %v241_v51 }
 0x168   :  { %v232_v54 = vpop.f32.mrf.mxu0 }
 0x169   :  { %v242_v55 = vadd.f32 %v232_v54, %v193_v52 }
 0x16a   :  { %v1530_v56 = vld [vmem:[#allocation2] sm:$0xff] }
 0x16b   :  { %247 = vst.msk [vmem:[#allocation2 + $0x8] sm:$0xff] %vm74_vm9, %v242_v55  ;;  %1047 = vrcp.f32 %v1530_v56 }
 0x16c   :  { %1049 = vrcp.f32 %v1532_v58 }
 0x170   :  { %v235_v4 = vpop.f32.mrf.mxu0 }
 0x171   :  { %v1048_v59 = vpop.eup %1047  ;;  %v243_v60 = vadd.f32 %v235_v4, %v194_v53 }
 0x172   :  { %v624_v26 = vmul.f32 %v1048_v59, %v1530_v56  ;;  %v1540_v62 = vld [vmem:[#allocation2 + $0x8] sm:$0xff]  ;;  %v1050_v0 = vpop.eup %1049 }
 0x173   :  { %248 = vst.msk [vmem:[#allocation2 + $0x10] sm:$0xff] %vm74_vm9, %v243_v60  ;;  %1051 = vrcp.f32 %v1540_v62  ;;  %v712_v6 = vmul.f32 %v1050_v0, %v1532_v58 }
 0x174   :  { %v628_v1 = vsub.f32 2.0, %v624_v26  ;;  %1053 = vrcp.f32 %v1537_v61 }
 0x175   :  { %1055 = vrcp.f32 %v1542_v63  ;;  %v716_v13 = vsub.f32 2.0, %v712_v6 }
 0x176   :  { %v632_v2 = vmul.f32 %v1048_v59, %v628_v1 }
 0x177   :  { %v720_v21 = vmul.f32 %v1050_v0, %v716_v13 }
 0x178   :  { %638 = vperm.xlu2 %1004, %v632_v2   ;;  %v238_v7 = vpop.f32.mrf.mxu0 }
 0x179   :  { %v1052_v8 = vpop.eup %1051  ;;  %v244_v11 = vadd.f32 %v238_v7, %v195_v5 }
 0x17a   :  { %v1054_v12 = vpop.eup %1053  ;;  %v625_v14 = vmul.f32 %v1052_v8, %v1540_v62  ;;  %v1550_v15 = vld [vmem:[#allocation2 + $0x10] sm:$0xff] }
 0x17b   :  { %v1056_v18 = vpop.eup %1055  ;;  %249 = vst.msk [vmem:[#allocation2 + $0x18] sm:$0xff] %vm74_vm9, %v244_v11  ;;  %1057 = vrcp.f32 %v1550_v15  ;;  %v669_v20 = vmul.f32 %v1054_v12, %v1537_v61 }
 0x17c   :  { %v629_v9 = vsub.f32 2.0, %v625_v14  ;;  %1059 = vrcp.f32 %v1552_v16  ;;  %v713_v48 = vmul.f32 %v1056_v18, %v1542_v63 }
 0x17d   :  { %1061 = vrcp.f32 %v1556_v3  ;;  %v673_v24 = vsub.f32 2.0, %v669_v20 }
 0x17e   :  { %v633_v22 = vmul.f32 %v1052_v8, %v629_v9  ;;  %v717_v28 = vsub.f32 2.0, %v713_v48 }
 0x17f   :  { %v677_v37 = vmul.f32 %v1054_v12, %v673_v24 }
 0x180   :  { %726 = vperm.xlu2 %1004, %v720_v21   ;;  %643 = vperm.xlu0 %1006, %v633_v22   ;;  %v721_v38 = vmul.f32 %v1056_v18, %v717_v28 }
 0x181   :  { %v1058_v23 = vpop.eup %1057 }
 0x182   :  { %v626_v29 = vmul.f32 %v1058_v23, %v1550_v15  ;;  %v1565_v30 = vld [vmem:[#allocation2 + $0x18] sm:$0xff]  ;;  %v1060_v32 = vpop.eup %1059 }
 0x183   :  { %1063 = vrcp.f32 %v1565_v30  ;;  %v1062_v35 = vpop.eup %1061  ;;  %v670_v40 = vmul.f32 %v1060_v32, %v1552_v16 }
 0x184   :  { %v630_v36 = vsub.f32 2.0, %v626_v29  ;;  %1065 = vrcp.f32 %v1562_v27  ;;  %v714_v41 = vmul.f32 %v1062_v35, %v1556_v3 }
 0x185   :  { %1067 = vrcp.f32 %v1567_v31  ;;  %v674_v44 = vsub.f32 2.0, %v670_v40 }
 0x186   :  { %v634_v39 = vmul.f32 %v1058_v23, %v630_v36  ;;  %1069 = vrcp.f32 %v1570_v33  ;;  %v718_v42 = vsub.f32 2.0, %v714_v41 }
 0x187   :  { %1071 = vrcp.f32 %v1577_v19  ;;  %v678_v10 = vmul.f32 %v1060_v32, %v674_v44 }
 0x188   :  { %731 = vperm.xlu0 %1006, %v721_v38   ;;  %687 = vperm.xlu2 %1004, %v677_v37   ;;  %1073 = vrcp.f32 %v750_v46  ;;  %v722_v54 = vmul.f32 %v1062_v35, %v718_v42 }
 0x189   :  { %v1064_v43 = vpop.eup %1063  ;;  %648 = vperm.xlu1 %1005, %v634_v39  }
 0x18a   :  { %v1066_v34 = vpop.eup %1065  ;;  %v627_v45 = vmul.f32 %v1064_v43, %v1565_v30 }
 0x18b   :  { %v1068_v47 = vpop.eup %1067  ;;  %v759_v51 = vmul.f32 %v1066_v34, %v1562_v27 }
 0x18c   :  { %v1070_v49 = vpop.eup %1069  ;;  %v631_v50 = vsub.f32 2.0, %v627_v45  ;;  %v715_v52 = vmul.f32 %v1068_v47, %v1567_v31 }
 0x18d   :  { %v671_v55 = vmul.f32 %v1070_v49, %v1570_v33  ;;  %v1072_v53 = vpop.eup %1071  ;;  %v763_v4 = vsub.f32 2.0, %v759_v51 }
 0x18e   :  { %v635_v17 = vmul.f32 %v1064_v43, %v631_v50  ;;  %v719_v59 = vsub.f32 2.0, %v715_v52  ;;  %v1074_v60 = vpop.eup %1073  ;;  %v757_v6 = vmul.f32 %v1072_v53, %v1577_v19 }
 0x18f   :  { %v675_v26 = vsub.f32 2.0, %v671_v55  ;;  %v767_v0 = vmul.f32 %v1066_v34, %v763_v4  ;;  %v758_v2 = vmul.f32 %v1074_v60, %v750_v46 }
 0x190   :  { %692 = vperm.xlu0 %1006, %v678_v10   ;;  %653 = vperm.xlu2 %1004, %v635_v17   ;;  %v723_v1 = vmul.f32 %v1068_v47, %v719_v59  ;;  %v761_v8 = vsub.f32 2.0, %v757_v6 }
 0x191   :  { %736 = vperm.xlu1 %1005, %v722_v54   ;;  %v679_v5 = vmul.f32 %v1070_v49, %v675_v26  ;;  %v762_v7 = vsub.f32 2.0, %v758_v2 }
 0x192   :  { %v765_v12 = vmul.f32 %v1072_v53, %v761_v8 }
 0x193   :  { %v766_v11 = vmul.f32 %v1074_v60, %v762_v7 }
 0x198   :  { %785 = vperm.xlu0 %1006, %v767_v0   ;;  %741 = vperm.xlu2 %1004, %v723_v1  }
 0x199   :  { %697 = vperm.xlu1 %1005, %v679_v5   ;;  %v683_v13 = vpop.permute.xlu1 %682 }
 0x19a   :  { %v700_v14 = vmul.f32 %v683_v13, %v1510_v57 }
 0x1a0   :  { %780 = vperm.xlu2 %1004, %v766_v11  }
 0x1a1   :  { %775 = vperm.xlu1 %1005, %v765_v12  }
 0x1a8   :  { %v771_v18 = vpop.permute.xlu0 %770 }
 0x1a9   :  { %796 = vrot.lane.b32.xlu1 %v700_v14, %s1111_s1  ;;  %v788_v9 = vmul.f32 %v771_v18, %v1516_v25 }
 0x1ab   :  { %828 = vrot.lane.b32.xlu0 %v788_v9, %s1112_s26 }
 0x1d2   :  { %v639_v20 = vpop.permute.xlu2 %638 }
 0x1da   :  { %v727_v21 = vpop.permute.xlu2 %726 }
 0x1db   :  { %v744_v22 = vmul.f32 %v727_v21, %v1532_v58 }
 0x1dd   :  { %812 = vrot.lane.b32.xlu2 %v744_v22, %s1113_s27 }
 0x1e2   :  { %v688_v48 = vpop.permute.xlu2 %687 }
 0x1e3   :  { %v701_v23 = vmul.f32 %v688_v48, %v1537_v61 }
 0x1e5   :  { %798 = vrot.lane.b32.xlu2 %v701_v23, %s1111_s1 }
 0x1ea   :  { %v654_v57 = vpop.permute.xlu2 %653 }
 0x1eb   :  { %v659_v53 = vmul.f32 %v654_v57, %v1565_v30 }
 0x1f2   :  { %v742_v24 = vpop.permute.xlu2 %741  ;;  %v644_v28 = vpop.permute.xlu0 %643 }
 0x1f3   :  { %v747_v29 = vmul.f32 %v742_v24, %v1567_v31  ;;  %v657_v1 = vmul.f32 %v644_v28, %v1540_v62 }
 0x1f5   :  { %818 = vrot.lane.b32.xlu2 %v747_v29, %s1113_s27 }
 0x1fa   :  { %v781_v25 = vpop.permute.xlu2 %780  ;;  %v732_v32 = vpop.permute.xlu0 %731 }
 0x1fb   :  { %v649_v35 = vpop.permute.xlu1 %648  ;;  %v790_v36 = vmul.f32 %v781_v25, %v750_v46  ;;  %v745_v37 = vmul.f32 %v732_v32, %v1542_v63 }
 0x1fd   :  { %832 = vrot.lane.b32.xlu2 %v790_v36, %s1112_s26  ;;  %814 = vrot.lane.b32.xlu0 %v745_v37, %s1113_s27 }
 0x202   :  { %v693_v58 = vpop.permute.xlu0 %692 }
 0x203   :  { %v737_v38 = vpop.permute.xlu1 %736  ;;  %v702_v61 = vmul.f32 %v693_v58, %v1552_v16 }
 0x204   :  { %v746_v39 = vmul.f32 %v737_v38, %v1556_v3  ;;  %v656_v3 = vmul.f32 %v639_v20, %v1530_v56  ;;  %v658_v56 = vmul.f32 %v649_v35, %v1550_v15 }
 0x205   :  { %800 = vrot.lane.b32.xlu0 %v702_v61, %s1111_s1 }
 0x206   :  { %816 = vrot.lane.b32.xlu1 %v746_v39, %s1113_s27 }
 0x20a   :  { %v786_v31 = vpop.permute.xlu0 %785 }
 0x20b   :  { %v698_v40 = vpop.permute.xlu1 %697  ;;  %v791_v41 = vmul.f32 %v786_v31, %v1562_v27 }
 0x20c   :  { %v703_v43 = vmul.f32 %v698_v40, %v1570_v33 }
 0x20d   :  { %834 = vrot.lane.b32.xlu0 %v791_v41, %s1112_s26 }
 0x20e   :  { %802 = vrot.lane.b32.xlu1 %v703_v43, %s1111_s1 }
 0x213   :  { %v776_v63 = vpop.permute.xlu1 %775 }
 0x214   :  { %v789_v34 = vmul.f32 %v776_v63, %v1577_v19 }
 0x216   :  { %830 = vrot.lane.b32.xlu1 %v789_v34, %s1112_s26 }
 0x21b   :  { %v797_v16 = vpop.permute.xlu1 %796 }
 0x21c   :  { %v841_v44 = vsel %vm840_vm10, %v656_v3, %v797_v16 }
 0x21d   :  { %v829_v33 = vpop.permute.xlu0 %828 }
 0x237   :  { %v813_v27 = vpop.permute.xlu2 %812 }
 0x238   :  { %v846_v45 = vsel %vm845_vm11, %v841_v44, %v813_v27 }
 0x239   :  { %v851_v46 = vsel %vm850_vm12, %v846_v45, %v829_v33 }
 0x23a   :  { %v856_v19 = vsel %vm855_vm13, %v851_v46, 0.0 }
 0x23b   :  { %860 = vst [vmem:[#allocation3] sm:$0xff] %v856_v19 }
 0x23f   :  { %v799_v47 = vpop.permute.xlu2 %798 }
 0x240   :  { %v842_v30 = vsel %vm840_vm10, %v657_v1, %v799_v47 }
 0x24f   :  { %v819_v42 = vpop.permute.xlu2 %818 }
 0x257   :  { %v833_v51 = vpop.permute.xlu2 %832 }
 0x26f   :  { %v815_v49 = vpop.permute.xlu0 %814 }
 0x270   :  { %v847_v2 = vsel %vm845_vm11, %v842_v30, %v815_v49 }
 0x277   :  { %v801_v50 = vpop.permute.xlu0 %800 }
 0x278   :  { %v817_v10 = vpop.permute.xlu1 %816  ;;  %v843_v17 = vsel %vm840_vm10, %v658_v56, %v801_v50 }
 0x279   :  { %v848_v52 = vsel %vm845_vm11, %v843_v17, %v817_v10 }
 0x27a   :  { %v853_v54 = vsel %vm850_vm12, %v848_v52, %v833_v51 }
 0x27b   :  { %v858_v55 = vsel %vm855_vm13, %v853_v54, 0.0 }
 0x27c   :  { %862 = vst [vmem:[#allocation3 + $0x10] sm:$0xff] %v858_v55 }
 0x27f   :  { %v835_v60 = vpop.permute.xlu0 %834 }
 0x280   :  { %v803_v4 = vpop.permute.xlu1 %802 }
 0x281   :  { %v844_v59 = vsel %vm840_vm10, %v659_v53, %v803_v4 }
 0x282   :  { %v849_v15 = vsel %vm845_vm11, %v844_v59, %v819_v42 }
 0x283   :  { %v854_v26 = vsel %vm850_vm12, %v849_v15, %v835_v60 }
 0x284   :  { %v859_v0 = vsel %vm855_vm13, %v854_v26, 0.0 }
 0x285   :  { %863 = vst [vmem:[#allocation3 + $0x18] sm:$0xff] %v859_v0 }
 0x288   :  { %v831_v5 = vpop.permute.xlu1 %830 }
 0x289   :  { %v852_v6 = vsel %vm850_vm12, %v847_v2, %v831_v5 }
 0x28a   :  { %v857_v7 = vsel %vm855_vm13, %v852_v6, 0.0 }
 0x28b   :  { %861 = vst [vmem:[#allocation3 + $0x8] sm:$0xff] %v857_v7 }
 0x28c   :  { %1098 = shalt.err (!%p1095_p3)
}
 0x28d   :  { %s1115_s13 = smov 128   ;;  %s1116_s14 = smov 8  }
 0x28e   :  { %879 = dma.vmem_to_hbm [thread:$0]  %s872_s7, 512, %s874_s18, [#allocation4], %s1115_s13, %s1115_s13, %s1116_s14  }
 0x28f   :  { %1099 = dma.done.wait [#allocation4], 512  }
 0x290   :  { %1100 = vsyncadd [#allocation4], 4294966784 }
 0x291   :  { %884 = vsyncpa [#allocation4], 1 }

// kernel: tpu_custom_call.1
= control target key start
LH: loop header
LB: loop body
LE: loop exit
PB: predicated region body
PF: predicated region fallthrough
CT: control target
= control target key end

     0   :  { %v1025_v1 = vmov 2   ;;  %v1026_v2 = vmov 1   ;;  %s1553_s0 = inlined_call_operand.vmem [shape: f32[4,128,17], index: 0, kind: input, shape index: {}]   ;;  %s1554_s1 = inlined_call_operand.vmem [shape: f32[4,128], index: 1, kind: input, shape index: {}]   ;;  %s1555_s2 = inlined_call_operand.vmem [shape: f32[32,8], index: 2, kind: input, shape index: {}]   ;;  %s1556_s3 = inlined_call_operand.vmem [shape: s8[32,128], index: 3, kind: input, shape index: {}]   ;;  %s1557_s4 = inlined_call_operand.vmem [shape: f32[32,64], index: 4, kind: input, shape index: {}]   ;;  %s1558_s5 = inlined_call_operand.hbm [shape: f32[32,128], index: 5, kind: output, shape index: {}]  }
   0x1   :  { %v1074_v0 = vld [vmem:[%s1555_s2] sm:$0xff]  ;;  %899 = vset.pattern.permute.xlu0 %v1025_v1  ;;  %901 = vset.pattern.permute.xlu1 %v1026_v2 }
   0x2   :  { %205 = vperm.xlu1 %901, %v1074_v0   ;;  %326 = vperm.xlu0 %899, %v1074_v0  }
   0x3   :  { %10 = vsyncpa [#allocation4], 0  ;;  %v1027_v3 = vmov 7   ;;  %v1028_v4 = vmov 6   ;;  %v1029_v5 = vmov 3   ;;  %v1084_v6 = vld [vmem:[%s1555_s2 + $0x8] sm:$0xff] }
   0x4   :  { %903 = vset.pattern.permute.xlu2 %v1027_v3  ;;  %v1030_v7 = vmov 5   ;;  %v1096_v8 = vld [vmem:[%s1555_s2 + $0x10] sm:$0xff]  ;;  %v1101_v9 = vld [vmem:[%s1555_s2 + $0x18] sm:$0xff]  ;;  %v1031_v10 = vmov 0   ;;  %v848_v14 = vld [vmem:[%s1553_s0 + $0xe8] sm:$0xff]  ;;  %v1032_v25 = vmov 4  }
   0x5   :  { %476 = vperm.xlu2 %903, %v1074_v0   ;;  %v850_v11 = vld [vmem:[%s1553_s0 + $0xf8] sm:$0xff]  ;;  %v849_v12 = vld [vmem:[%s1553_s0 + $0xf0] sm:$0xff]  ;;  %v847_v16 = vld [vmem:[%s1553_s0 + $0xe0] sm:$0xff]  ;;  %vm27_vm9 = vcmask 138240   ;;  %s1036_s24 = smov 48   ;;  %s1037_s2 = smov 32  }
   0x6   :  { %v866_v13 = vld [vmem:[%s1553_s0 + $0x178] sm:$0xff]  ;;  %287 = vmatpush.msra.mxu1 %v850_v11  ;;  %v865_v15 = vld [vmem:[%s1553_s0 + $0x170] sm:$0xff]  ;;  %v864_v17 = vld [vmem:[%s1553_s0 + $0x168] sm:$0xff]  ;;  %vm793_vm10 = vcmask 130048   ;;  %vm798_vm11 = vcmask 261120   ;;  %vm803_vm12 = vcmask 392192  }
   0x7   :  { %408 = vmatpush.msra.mxu2 %v866_v13  ;;  %v846_v18 = vld [vmem:[%s1553_s0 + $0xd8] sm:$0xff]  ;;  %v863_v20 = vld [vmem:[%s1553_s0 + $0x160] sm:$0xff]  ;;  %v845_v21 = vld [vmem:[%s1553_s0 + $0xd0] sm:$0xff]  ;;  %vm808_vm13 = vcmask 523264   ;;  %s1038_s25 = smov [#allocation3]   ;;  %s1039_s29 = smov 128  }
   0x8   :  { %288 = vmatpush.msra.mxu1 %v849_v12  ;;  %v882_v19 = vld [vmem:[%s1553_s0 + $0x1f8] sm:$0xff]  ;;  %v881_v22 = vld [vmem:[%s1553_s0 + $0x1f0] sm:$0xff]  ;;  %v844_v24 = vld [vmem:[%s1553_s0 + $0xc8] sm:$0xff]  ;;  %s821_s26 = sshll.u32 %s1038_s25, 4  ;;  %s1040_s30 = smov 8   ;;  %s822_s26 = int_to_ptr.vmem [resolvable:$true] %s821_s26 }
   0x9   :  { %409 = vmatpush.msra.mxu2 %v865_v15  ;;  %529 = vmatpush.msra.mxu3 %v882_v19  ;;  %v862_v23 = vld [vmem:[%s1553_s0 + $0x158] sm:$0xff]  ;;  %v861_v26 = vld [vmem:[%s1553_s0 + $0x150] sm:$0xff]  ;;  %v880_v27 = vld [vmem:[%s1553_s0 + $0x1e8] sm:$0xff] }
   0xa   :  { %902 = vset.pattern.permute.xlu1 %v1028_v4  ;;  %900 = vset.pattern.permute.xlu0 %v1029_v5  ;;  %v843_v28 = vld [vmem:[%s1553_s0 + $0xc0] sm:$0xff]  ;;  %v860_v29 = vld [vmem:[%s1553_s0 + $0x148] sm:$0xff]  ;;  %v842_v31 = vld [vmem:[%s1553_s0 + $0xb8] sm:$0xff] }
   0xb   :  { %355 = vperm.xlu1 %902, %v1074_v0   ;;  %447 = vperm.xlu0 %900, %v1074_v0   ;;  %v879_v30 = vld [vmem:[%s1553_s0 + $0x1e0] sm:$0xff]  ;;  %v878_v33 = vld [vmem:[%s1553_s0 + $0x1d8] sm:$0xff]  ;;  %v841_v34 = vld [vmem:[%s1553_s0 + $0xb0] sm:$0xff] }
   0xc   :  { %289 = vmatpush.msra.mxu1 %v848_v14  ;;  %410 = vmatpush.msra.mxu2 %v864_v17  ;;  %v859_v32 = vld [vmem:[%s1553_s0 + $0x140] sm:$0xff]  ;;  %v858_v35 = vld [vmem:[%s1553_s0 + $0x138] sm:$0xff]  ;;  %v877_v36 = vld [vmem:[%s1553_s0 + $0x1d0] sm:$0xff] }
   0xd   :  { %904 = vset.pattern.permute.xlu2 %v1025_v1  ;;  %530 = vmatpush.msra.mxu3 %v881_v22  ;;  %v44_v37 = vld [vmem:[%s1556_s3] sm:$0xff]  ;;  %v840_v38 = vld [vmem:[%s1553_s0 + $0xa8] sm:$0xff]  ;;  %v857_v39 = vld [vmem:[%s1553_s0 + $0x130] sm:$0xff]  ;;  %s823_s3 = sshll.u32 %s1558_s5, 4  ;;  %s824_s3 = int_to_ptr.hbm [resolvable:$true] %s823_s3 }
   0xe   :  { %330 = vperm.xlu2 %904, %v1084_v6   ;;  %290 = vmatpush.msra.mxu1 %v847_v16  ;;  %v876_v40 = vld [vmem:[%s1553_s0 + $0x1c8] sm:$0xff]  ;;  %v839_v41 = vld [vmem:[%s1553_s0 + $0xa0] sm:$0xff]  ;;  %vm45_vm0 = vnez %v44_v37  ;;  %v838_v45 = vld [vmem:[%s1553_s0 + $0x98] sm:$0xff] }
   0xf   :  { %411 = vmatpush.msra.mxu2 %v863_v20  ;;  %531 = vmatpush.msra.mxu3 %v880_v27  ;;  %v856_v43 = vld [vmem:[%s1553_s0 + $0x128] sm:$0xff]  ;;  %v875_v44 = vld [vmem:[%s1553_s0 + $0x1c0] sm:$0xff]  ;;  %v874_v47 = vld [vmem:[%s1553_s0 + $0x1b8] sm:$0xff]  ;;  %v1230_v48 = vsel %vm45_vm0, 16843009, %v1031_v10 }
  0x10   :  { %291 = vmatpush.msra.mxu1 %v846_v18  ;;  %v855_v46 = vld [vmem:[%s1553_s0 + $0x120] sm:$0xff]  ;;  %v837_v49 = vld [vmem:[%s1553_s0 + $0x90] sm:$0xff]  ;;  %v854_v50 = vld [vmem:[%s1553_s0 + $0x118] sm:$0xff]  ;;  %v105_v53 = vunpack.c.0.s8 %v1230_v48  ;;  %v106_v13 = vunpack.c.1.s8 %v1230_v48 }
  0x11   :  { %412 = vmatpush.msra.mxu2 %v862_v23  ;;  %532 = vmatpush.msra.mxu3 %v879_v30  ;;  %v873_v51 = vld [vmem:[%s1553_s0 + $0x1b0] sm:$0xff]  ;;  %v836_v52 = vld [vmem:[%s1553_s0 + $0x88] sm:$0xff]  ;;  %v835_v56 = vld [vmem:[%s1553_s0 + $0x80] sm:$0xff] }
  0x12   :  { %292 = vmatpush.msra.mxu1 %v845_v21  ;;  %v853_v54 = vld [vmem:[%s1553_s0 + $0x110] sm:$0xff]  ;;  %v872_v55 = vld [vmem:[%s1553_s0 + $0x1a8] sm:$0xff]  ;;  %v871_v58 = vld [vmem:[%s1553_s0 + $0x1a0] sm:$0xff]  ;;  %v109_v60 = vpack.c.b16 %v105_v53, %v105_v53  ;;  %v111_v21 = vpack.c.b16 %v106_v13, %v106_v13 }
  0x13   :  { %905 = vset.pattern.permute.xlu1 %v1029_v5  ;;  %907 = vset.pattern.permute.xlu0 %v1026_v2  ;;  %v852_v57 = vld [vmem:[%s1553_s0 + $0x108] sm:$0xff]  ;;  %v851_v61 = vld [vmem:[%s1553_s0 + $0x100] sm:$0xff]  ;;  %v870_v62 = vld [vmem:[%s1553_s0 + $0x198] sm:$0xff] }
  0x14   :  { %451 = vperm.xlu1 %905, %v1084_v6   ;;  %209 = vperm.xlu0 %907, %v1084_v6   ;;  %v869_v63 = vld [vmem:[%s1553_s0 + $0x190] sm:$0xff]  ;;  %v1300_v19 = vld [vmem:[%s1554_s1 + $0x3] ss:$0 sm:$0xff] }
  0x15   :  { %293 = vmatpush.msra.mxu1 %v844_v24  ;;  %413 = vmatpush.msra.mxu2 %v861_v26 }
  0x16   :  { %906 = vset.pattern.permute.xlu2 %v1030_v7  ;;  %533 = vmatpush.msra.mxu3 %v878_v33 }
  0x17   :  { %234 = vperm.xlu2 %906, %v1074_v0   ;;  %294 = vmatpush.msra.mxu1 %v843_v28 }
  0x18   :  { %414 = vmatpush.msra.mxu2 %v860_v29  ;;  %534 = vmatpush.msra.mxu3 %v877_v36  ;;  %v112_v29 = vpack.c.b8 %v111_v21, %v111_v21 }
  0x19   :  { %295 = vmatpush.msra.mxu1 %v842_v31 }
  0x1a   :  { %415 = vmatpush.msra.mxu2 %v859_v32  ;;  %535 = vmatpush.msra.mxu3 %v876_v40  ;;  %vm118_vm3 = vnez %v112_v29 }
  0x1b   :  { %296 = vmatpush.msra.mxu1 %v841_v34  ;;  %v122_v36 = vsel %vm118_vm3, 16843009, %v1031_v10 }
  0x1c   :  { %908 = vset.pattern.permute.xlu1 %v1028_v4  ;;  %912 = vset.pattern.permute.xlu0 %v1030_v7 }
  0x1d   :  { %359 = vperm.xlu1 %908, %v1084_v6   ;;  %238 = vperm.xlu0 %912, %v1084_v6  }
  0x1e   :  { %416 = vmatpush.msra.mxu2 %v858_v35  ;;  %297 = vmatpush.msra.mxu1 %v840_v38 }
  0x1f   :  { %909 = vset.pattern.permute.xlu2 %v1027_v3  ;;  %536 = vmatpush.msra.mxu3 %v875_v44 }
  0x20   :  { %480 = vperm.xlu2 %909, %v1084_v6   ;;  %417 = vmatpush.msra.mxu2 %v857_v39 }
  0x21   :  { %298 = vmatpush.msra.mxu1 %v839_v41  ;;  %537 = vmatpush.msra.mxu3 %v874_v47  ;;  %v107_v47 = vunpack.c.2.s8 %v1230_v48 }
  0x22   :  { %418 = vmatpush.msra.mxu2 %v856_v43 }
  0x23   :  { %299 = vmatpush.msra.mxu1 %v838_v45  ;;  %538 = vmatpush.msra.mxu3 %v873_v51 }
  0x24   :  { %419 = vmatpush.msra.mxu2 %v855_v46  ;;  %v126_v46 = vunpack.c.0.s8 %v122_v36 }
  0x25   :  { %910 = vset.pattern.permute.xlu1 %v1025_v1  ;;  %917 = vset.pattern.permute.xlu0 %v1029_v5 }
  0x26   :  { %334 = vperm.xlu1 %910, %v1096_v8   ;;  %459 = vperm.xlu0 %917, %v1101_v9   ;;  %vm1317_vm4 = vcmp.ne.s32.totalorder %v126_v46, 0 }
  0x27   :  { %300 = vmatpush.msra.mxu1 %v837_v49  ;;  %420 = vmatpush.msra.mxu2 %v854_v50 }
  0x28   :  { %911 = vset.pattern.permute.xlu2 %v1029_v5  ;;  %539 = vmatpush.msra.mxu3 %v872_v55  ;;  %v113_v55 = vpack.c.b16 %v107_v47, %v107_v47 }
  0x29   :  { %455 = vperm.xlu2 %911, %v1096_v8   ;;  %301 = vmatpush.msra.mxu1 %v836_v52 }
  0x2a   :  { %421 = vmatpush.msra.mxu2 %v853_v54  ;;  %540 = vmatpush.msra.mxu3 %v871_v58 }
  0x2b   :  { %302 = vmatpush.msra.mxu1 %v835_v56 }
  0x2c   :  { %422 = vmatpush.msra.mxu2 %v852_v57  ;;  %541 = vmatpush.msra.mxu3 %v870_v62 }
  0x2e   :  { %913 = vset.pattern.permute.xlu1 %v1026_v2  ;;  %922 = vset.pattern.permute.xlu0 %v1030_v7 }
  0x2f   :  { %213 = vperm.xlu1 %913, %v1096_v8   ;;  %246 = vperm.xlu0 %922, %v1101_v9  }
  0x30   :  { %423 = vmatpush.msra.mxu2 %v851_v61  ;;  %542 = vmatpush.msra.mxu3 %v869_v63 }
  0x31   :  { %914 = vset.pattern.permute.xlu2 %v1028_v4 }
  0x32   :  { %363 = vperm.xlu2 %914, %v1096_v8  }
  0x37   :  { %915 = vset.pattern.permute.xlu1 %v1027_v3  ;;  %925 = vset.pattern.permute.xlu0 %v1031_v10 }
  0x38   :  { %484 = vperm.xlu1 %915, %v1096_v8   ;;  %63 = vperm.xlu0 %925, %v1096_v8  }
  0x3a   :  { %916 = vset.pattern.permute.xlu2 %v1025_v1  ;;  %v868_v1 = vld [vmem:[%s1553_s0 + $0x188] sm:$0xff] }
  0x3b   :  { %338 = vperm.xlu2 %916, %v1101_v9   ;;  %543 = vmatpush.msra.mxu3 %v868_v1  ;;  %v114_v1 = vpack.c.b8 %v113_v55, %v113_v55 }
  0x3d   :  { %vm119_vm5 = vnez %v114_v1 }
  0x40   :  { %918 = vset.pattern.permute.xlu1 %v1030_v7 }
  0x41   :  { %242 = vperm.xlu1 %918, %v1096_v8  }
  0x43   :  { %919 = vset.pattern.permute.xlu2 %v1026_v2  ;;  %v867_v2 = vld [vmem:[%s1553_s0 + $0x180] sm:$0xff] }
  0x44   :  { %217 = vperm.xlu2 %919, %v1101_v9   ;;  %544 = vmatpush.msra.mxu3 %v867_v2 }
  0x49   :  { %920 = vset.pattern.permute.xlu1 %v1028_v4  ;;  %v1287_v4 = vld [vmem:[%s1554_s1 + $0x1] ss:$0 sm:$0xff] }
  0x4a   :  { %367 = vperm.xlu1 %920, %v1101_v9  }
  0x4c   :  { %921 = vset.pattern.permute.xlu2 %v1027_v3  ;;  %v1282_v3 = vld [vmem:[%s1554_s1 + $0x2] ss:$0 sm:$0xff] }
  0x4d   :  { %488 = vperm.xlu2 %921, %v1101_v9  }
  0x52   :  { %923 = vset.pattern.permute.xlu1 %v1031_v10 }
  0x53   :  { %53 = vperm.xlu1 %923, %v1074_v0  }
  0x55   :  { %924 = vset.pattern.permute.xlu2 %v1032_v25 }
  0x56   :  { %85 = vperm.xlu2 %924, %v1074_v0   ;;  %v110_v0 = vpack.c.b8 %v109_v60, %v109_v60 }
  0x58   :  { %vm117_vm1 = vnez %v110_v0 }
  0x5b   :  { %58 = vperm.xlu1 %923, %v1084_v6  }
  0x5e   :  { %89 = vperm.xlu2 %924, %v1084_v6   ;;  %v121_v6 = vsel %vm117_vm1, 16843009, %v1031_v10 }
  0x5f   :  { %v1212_v42 = vpop.permute.xlu2 %476  ;;  %v125_v12 = vunpack.c.0.s8 %v121_v6 }
  0x61   :  { %vm1293_vm2 = vcmp.ne.s32.totalorder %v125_v12, 0  ;;  %v123_v12 = vsel %vm119_vm5, 16843009, %v1031_v10 }
  0x63   :  { %926 = vset.pattern.permute.xlu1 %v1032_v25 }
  0x64   :  { %93 = vperm.xlu1 %926, %v1096_v8  }
  0x66   :  { %927 = vset.pattern.permute.xlu2 %v1031_v10 }
  0x67   :  { %68 = vperm.xlu2 %927, %v1101_v9  }
  0x68   :  { %v331_v59 = vpop.permute.xlu2 %330 }
  0x69   :  { %v343_v38 = vadd.f32 %v1282_v3, %v331_v59 }
  0x6b   :  { %v347_v51 = vmul.f32 0.01, %v343_v38 }
  0x6c   :  { %97 = vperm.xlu1 %926, %v1101_v9  }
  0x6d   :  { %v351_v58 = vmax.f32 %v343_v38, %v347_v51 }
  0x71   :  { %v235_v5 = vpop.permute.xlu2 %234 }
  0x74   :  { %v206_v7 = vpop.permute.xlu1 %205  ;;  %v327_v8 = vpop.permute.xlu0 %326 }
  0x75   :  { %v221_v9 = vadd.f32 %v1287_v4, %v206_v7  ;;  %v342_v11 = vadd.f32 %v1282_v3, %v327_v8 }
  0x77   :  { %v225_v14 = vmul.f32 0.01, %v221_v9  ;;  %v346_v15 = vmul.f32 0.01, %v342_v11 }
  0x79   :  { %v229_v16 = vmax.f32 %v221_v9, %v225_v14  ;;  %v350_v18 = vmax.f32 %v342_v11, %v346_v15  ;;  %v108_v11 = vunpack.c.3.s8 %v1230_v48  ;;  %v164_v15 = vld [vmem:[%s1553_s0 + $0x78] sm:$0xff] }
  0x7a   :  { %v481_v20 = vpop.permute.xlu2 %480  ;;  %165 = vmatpush.msra.mxu0 %v164_v15 }
  0x7b   :  { %v249_v22 = vsub.f32 %v229_v16, %v235_v5  ;;  %v115_v21 = vpack.c.b16 %v108_v11, %v108_v11 }
  0x7d   :  { %v253_v23 = vsel %vm1293_vm2, %v249_v22, -1e+30  ;;  %v356_v24 = vpop.permute.xlu1 %355  ;;  %v448_v25 = vpop.permute.xlu0 %447  ;;  %v116_v29 = vpack.c.b8 %v115_v21, %v115_v21 }
  0x7e   :  { %v257_v26 = vmul.f32 1.442695, %v253_v23  ;;  %v370_v27 = vsub.f32 %v350_v18, %v356_v24  ;;  %v463_v28 = vadd.f32 %v1300_v19, %v448_v25  ;;  %v163_v18 = vld [vmem:[%s1553_s0 + $0x70] sm:$0xff]  ;;  %v162_v24 = vld [vmem:[%s1553_s0 + $0x68] sm:$0xff] }
  0x7f   :  { %166 = vmatpush.msra.mxu0 %v163_v18  ;;  %vm120_vm7 = vnez %v116_v29  ;;  %v934_v29 = vld [vmem:[%s1554_s1] ss:$0 sm:$0xff]  ;;  %s1035_s1 = smov 16  }
  0x80   :  { %935 = vpow2.f32 %v257_v26  ;;  %v374_v30 = vsel %vm1293_vm2, %v370_v27, -1e+30  ;;  %v467_v31 = vmul.f32 0.01, %v463_v28 }
  0x81   :  { %v378_v32 = vmul.f32 1.442695, %v374_v30  ;;  %167 = vmatpush.msra.mxu0 %v162_v24  ;;  %v161_v30 = vld [vmem:[%s1553_s0 + $0x60] sm:$0xff] }
  0x82   :  { %v471_v33 = vmax.f32 %v463_v28, %v467_v31 }
  0x83   :  { %v1307_v34 = vpop.permute.xlu2 %455  ;;  %937 = vpow2.f32 %v378_v32  ;;  %168 = vmatpush.msra.mxu0 %v161_v30 }
  0x84   :  { %v491_v35 = vsub.f32 %v471_v33, %v1212_v42  ;;  %v160_v33 = vld [vmem:[%s1553_s0 + $0x58] sm:$0xff] }
  0x85   :  { %169 = vmatpush.msra.mxu0 %v160_v33 }
  0x86   :  { %v936_v37 = vpop.eup %935  ;;  %v495_v39 = vsel %vm1293_vm2, %v491_v35, -1e+30  ;;  %v452_v40 = vpop.permute.xlu1 %451  ;;  %v465_v35 = vadd.f32 %v1300_v19, %v1307_v34  ;;  %v157_v34 = vld [vmem:[%s1553_s0 + $0x40] sm:$0xff] }
  0x87   :  { %v210_v41 = vpop.permute.xlu0 %209  ;;  %v499_v43 = vmul.f32 1.442695, %v495_v39  ;;  %v464_v44 = vadd.f32 %v1300_v19, %v452_v40  ;;  %303 = vmatmul.f32.vlgmr.msra.gmra.mxu1 %v936_v37  ;;  %v159_v39 = vld [vmem:[%s1553_s0 + $0x50] sm:$0xff]  ;;  %v158_v40 = vld [vmem:[%s1553_s0 + $0x48] sm:$0xff] }
  0x88   :  { %v222_v45 = vadd.f32 %v1287_v4, %v210_v41  ;;  %170 = vmatpush.msra.mxu0 %v159_v39 }
  0x89   :  { %v938_v42 = vpop.eup %937  ;;  %v468_v49 = vmul.f32 0.01, %v464_v44  ;;  %939 = vpow2.f32 %v499_v43  ;;  %v469_v43 = vmul.f32 0.01, %v465_v35 }
  0x8a   :  { %v226_v50 = vmul.f32 0.01, %v222_v45  ;;  %424 = vmatmul.f32.vlgmr.msra.gmra.mxu2 %v938_v42  ;;  %171 = vmatpush.msra.mxu0 %v158_v40  ;;  %v156_v42 = vld [vmem:[%s1553_s0 + $0x38] sm:$0xff] }
  0x8b   :  { %v472_v52 = vmax.f32 %v464_v44, %v468_v49  ;;  %v473_v49 = vmax.f32 %v465_v35, %v469_v43 }
  0x8c   :  { %v364_v54 = vpop.permute.xlu2 %363  ;;  %v230_v56 = vmax.f32 %v222_v45, %v226_v50  ;;  %172 = vmatpush.msra.mxu0 %v157_v34 }
  0x8d   :  { %v492_v57 = vsub.f32 %v472_v52, %v481_v20  ;;  %v127_v20 = vunpack.c.0.s8 %v123_v12  ;;  %v155_v52 = vld [vmem:[%s1553_s0 + $0x30] sm:$0xff] }
  0x8e   :  { %173 = vmatpush.msra.mxu0 %v156_v42 }
  0x8f   :  { %v940_v59 = vpop.eup %939  ;;  %v496_v60 = vsel %vm1317_vm4, %v492_v57, -1e+30  ;;  %v360_v61 = vpop.permute.xlu1 %359  ;;  %vm1341_vm6 = vcmp.ne.s32.totalorder %v127_v20, 0 }
  0x90   :  { %v239_v62 = vpop.permute.xlu0 %238  ;;  %v501_v63 = vmul.f32 1.442695, %v496_v60  ;;  %v371_v0 = vsub.f32 %v351_v58, %v360_v61  ;;  %545 = vmatmul.f32.vlgmr.msra.gmra.mxu3 %v940_v59  ;;  %174 = vmatpush.msra.mxu0 %v155_v52  ;;  %v154_v58 = vld [vmem:[%s1553_s0 + $0x28] sm:$0xff]  ;;  %v153_v61 = vld [vmem:[%s1553_s0 + $0x20] sm:$0xff] }
  0x91   :  { %v250_v2 = vsub.f32 %v230_v56, %v239_v62 }
  0x92   :  { %941 = vpow2.f32 %v501_v63  ;;  %v375_v5 = vsel %vm1317_vm4, %v371_v0, -1e+30  ;;  %175 = vmatpush.msra.mxu0 %v154_v58  ;;  %v152_v0 = vld [vmem:[%s1553_s0 + $0x18] sm:$0xff] }
  0x93   :  { %v254_v6 = vsel %vm1317_vm4, %v250_v2, -1e+30  ;;  %v380_v7 = vmul.f32 1.442695, %v375_v5 }
  0x94   :  { %v259_v8 = vmul.f32 1.442695, %v254_v6  ;;  %176 = vmatpush.msra.mxu0 %v153_v61  ;;  %v151_v6 = vld [vmem:[%s1553_s0 + $0x10] sm:$0xff] }
  0x95   :  { %v1327_v9 = vpop.permute.xlu2 %338  ;;  %943 = vpow2.f32 %v380_v7 }
  0x96   :  { %945 = vpow2.f32 %v259_v8  ;;  %177 = vmatpush.msra.mxu0 %v152_v0  ;;  %v345_v7 = vadd.f32 %v1282_v3, %v1327_v9 }
  0x98   :  { %v942_v13 = vpop.eup %941  ;;  %v335_v14 = vpop.permute.xlu1 %334  ;;  %178 = vmatpush.msra.mxu0 %v151_v6  ;;  %v349_v18 = vmul.f32 0.01, %v345_v7 }
  0x99   :  { %v344_v16 = vadd.f32 %v1282_v3, %v335_v14  ;;  %548 = vmatmul.f32.gmra.mxu3 %v942_v13  ;;  %v460_v28 = vpop.permute.xlu0 %459  ;;  %v150_v13 = vld [vmem:[%s1553_s0 + $0x8] sm:$0xff] }
  0x9a   :  { %v466_v32 = vadd.f32 %v1300_v19, %v460_v28  ;;  %v124_v19 = vsel %vm120_vm7, 16843009, %v1031_v10  ;;  %179 = vmatpush.msra.mxu0 %v150_v13  ;;  %v353_v21 = vmax.f32 %v345_v7, %v349_v18 }
  0x9b   :  { %v944_v22 = vpop.eup %943  ;;  %v348_v48 = vmul.f32 0.01, %v344_v16  ;;  %v128_v47 = vunpack.c.0.s8 %v124_v19 }
  0x9c   :  { %v946_v23 = vpop.eup %945  ;;  %427 = vmatmul.f32.gmra.mxu2 %v944_v22  ;;  %v470_v41 = vmul.f32 0.01, %v466_v32 }
  0x9d   :  { %v352_v25 = vmax.f32 %v344_v16, %v348_v48  ;;  %306 = vmatmul.f32.gmra.mxu1 %v946_v23  ;;  %vm1374_vm8 = vcmp.ne.s32.totalorder %v128_v47, 0  ;;  %v149_v16 = vld [vmem:[%s1553_s0] sm:$0xff]  ;;  %v1033_v47 = vmov 0.0  }
  0x9e   :  { %v218_v27 = vpop.permute.xlu2 %217  ;;  %v474_v44 = vmax.f32 %v466_v32, %v470_v41  ;;  %180 = vmatpush.msra.mxu0 %v149_v16  ;;  %32 = vst.msk [vmem:[#allocation2 + $0x20] sm:$0xff] %vm27_vm9, %v1033_v47 }
  0x9f   :  { %v372_v31 = vsub.f32 %v352_v25, %v364_v54  ;;  %v224_v45 = vadd.f32 %v1287_v4, %v218_v27  ;;  %28 = vst.msk [vmem:[#allocation2] sm:$0xff] %vm27_vm9, %v1033_v47 }
  0xa0   :  { %29 = vst.msk [vmem:[#allocation2 + $0x8] sm:$0xff] %vm27_vm9, %v1033_v47 }
  0xa1   :  { %v376_v36 = vsel %vm1341_vm6, %v372_v31, -1e+30  ;;  %v214_v37 = vpop.permute.xlu1 %213  ;;  %v228_v56 = vmul.f32 0.01, %v224_v45  ;;  %v247_v1 = vpop.permute.xlu0 %246  ;;  %30 = vst.msk [vmem:[#allocation2 + $0x10] sm:$0xff] %vm27_vm9, %v1033_v47 }
  0xa2   :  { %v382_v38 = vmul.f32 1.442695, %v376_v36  ;;  %v223_v10 = vadd.f32 %v1287_v4, %v214_v37  ;;  %31 = vst.msk [vmem:[#allocation2 + $0x18] sm:$0xff] %vm27_vm9, %v1033_v47 }
  0xa3   :  { %v232_v63 = vmax.f32 %v224_v45, %v228_v56  ;;  %33 = vst.msk [vmem:[#allocation2 + $0x28] sm:$0xff] %vm27_vm9, %v1033_v47 }
  0xa4   :  { %947 = vpow2.f32 %v382_v38  ;;  %v227_v59 = vmul.f32 0.01, %v223_v10  ;;  %34 = vst.msk [vmem:[#allocation2 + $0x30] sm:$0xff] %vm27_vm9, %v1033_v47 }
  0xa5   :  { %v252_v12 = vsub.f32 %v232_v63, %v247_v1  ;;  %35 = vst.msk [vmem:[#allocation2 + $0x38] sm:$0xff] %vm27_vm9, %v1033_v47  ;;  %v1034_v1 = vmov 16  }
  0xa6   :  { %v231_v2 = vmax.f32 %v223_v10, %v227_v59  ;;  %36 = vst.msk [vmem:[#allocation2 + $0x40] sm:$0xff] %vm27_vm9, %v1033_v47  ;;  %929 = vset.pattern.permute.xlu1 %v1034_v1  ;;  %930 = vset.pattern.permute.xlu0 %v1034_v1 }
  0xa7   :  { %v489_v46 = vpop.permute.xlu2 %488  ;;  %v256_v9 = vsel %vm1374_vm8, %v252_v12, -1e+30  ;;  %37 = vst.msk [vmem:[#allocation2 + $0x48] sm:$0xff] %vm27_vm9, %v1033_v47  ;;  %928 = vset.pattern.permute.xlu2 %v1034_v1 }
  0xa8   :  { %v494_v55 = vsub.f32 %v474_v44, %v489_v46  ;;  %v263_v20 = vmul.f32 1.442695, %v256_v9  ;;  %38 = vst.msk [vmem:[#allocation2 + $0x50] sm:$0xff] %vm27_vm9, %v1033_v47 }
  0xa9   :  { %39 = vst.msk [vmem:[#allocation2 + $0x58] sm:$0xff] %vm27_vm9, %v1033_v47 }
  0xaa   :  { %v948_v50 = vpop.eup %947  ;;  %v485_v51 = vpop.permute.xlu1 %484  ;;  %v498_v62 = vsel %vm1374_vm8, %v494_v55, -1e+30  ;;  %40 = vst.msk [vmem:[#allocation2 + $0x60] sm:$0xff] %vm27_vm9, %v1033_v47 }
  0xab   :  { %v493_v54 = vsub.f32 %v473_v49, %v485_v51  ;;  %430 = vmatmul.f32.gmra.mxu2 %v948_v50  ;;  %v505_v5 = vmul.f32 1.442695, %v498_v62  ;;  %v64_v37 = vpop.permute.xlu0 %63  ;;  %41 = vst.msk [vmem:[#allocation2 + $0x68] sm:$0xff] %vm27_vm9, %v1033_v47 }
  0xac   :  { %v74_v39 = vadd.f32 %v934_v29, %v64_v37  ;;  %42 = vst.msk [vmem:[#allocation2 + $0x70] sm:$0xff] %vm27_vm9, %v1033_v47 }
  0xad   :  { %v497_v4 = vsel %vm1341_vm6, %v493_v54, -1e+30  ;;  %43 = vst.msk [vmem:[#allocation2 + $0x78] sm:$0xff] %vm27_vm9, %v1033_v47  ;;  %v387_v7 = vld [vmem:[#allocation2 + $0x40] sm:$0xff] }
  0xae   :  { %v503_v60 = vmul.f32 1.442695, %v497_v4  ;;  %v78_v44 = vmul.f32 0.01, %v74_v39 }
  0xb0   :  { %949 = vpow2.f32 %v503_v60  ;;  %v86_v24 = vpop.permute.xlu2 %85  ;;  %v82_v49 = vmax.f32 %v74_v39, %v78_v44  ;;  %v269_v44 = vld [vmem:[#allocation2 + $0x38] sm:$0xff] }
  0xb1   :  { %951 = vpow2.f32 %v505_v5  ;;  %v508_v12 = vld [vmem:[#allocation2 + $0x60] sm:$0xff] }
  0xb2   :  { %v509_v9 = vld [vmem:[#allocation2 + $0x68] sm:$0xff] }
  0xb3   :  { %v243_v8 = vpop.permute.xlu1 %242  ;;  %v510_v37 = vld [vmem:[#allocation2 + $0x70] sm:$0xff] }
  0xb4   :  { %v251_v11 = vsub.f32 %v231_v2, %v243_v8  ;;  %v266_v2 = vld [vmem:[#allocation2 + $0x20] sm:$0xff] }
  0xb6   :  { %v950_v14 = vpop.eup %949  ;;  %v255_v15 = vsel %vm1341_vm6, %v251_v11, -1e+30 }
  0xb7   :  { %v261_v3 = vmul.f32 1.442695, %v255_v15  ;;  %551 = vmatmul.f32.gmra.mxu3 %v950_v14  ;;  %v952_v22 = vpop.eup %951 }
  0xb8   :  { %v90_v36 = vpop.permute.xlu2 %89 }
  0xb9   :  { %953 = vpow2.f32 %v261_v3  ;;  %v267_v3 = vld [vmem:[#allocation2 + $0x28] sm:$0xff] }
  0xba   :  { %955 = vpow2.f32 %v263_v20 }
  0xbc   :  { %v368_v48 = vpop.permute.xlu1 %367 }
  0xbd   :  { %v373_v23 = vsub.f32 %v353_v21, %v368_v48 }
  0xbf   :  { %v954_v25 = vpop.eup %953  ;;  %v377_v27 = vsel %vm1374_vm8, %v373_v23, -1e+30  ;;  %554 = vmatmul.f32.gmra.mxu3 %v952_v22 }
  0xc0   :  { %v384_v28 = vmul.f32 1.442695, %v377_v27  ;;  %309 = vmatmul.f32.gmra.mxu1 %v954_v25  ;;  %v956_v30 = vpop.eup %955 }
  0xc1   :  { %v69_v46 = vpop.permute.xlu2 %68 }
  0xc2   :  { %957 = vpow2.f32 %v384_v28  ;;  %v75_v50 = vadd.f32 %v934_v29, %v69_v46 }
  0xc4   :  { %v79_v56 = vmul.f32 0.01, %v75_v50 }
  0xc5   :  { %v54_v31 = vpop.permute.xlu1 %53 }
  0xc6   :  { %v72_v32 = vadd.f32 %v934_v29, %v54_v31  ;;  %v83_v53 = vmax.f32 %v75_v50, %v79_v56 }
  0xc8   :  { %v958_v33 = vpop.eup %957  ;;  %v76_v35 = vmul.f32 0.01, %v72_v32  ;;  %312 = vmatmul.f32.gmra.mxu1 %v956_v30 }
  0xc9   :  { %433 = vmatmul.f32.gmra.mxu2 %v958_v33  ;;  %v389_v33 = vld [vmem:[#allocation2 + $0x50] sm:$0xff] }
  0xca   :  { %v80_v38 = vmax.f32 %v72_v32, %v76_v35 }
  0xcc   :  { %v100_v40 = vsub.f32 %v80_v38, %v86_v24  ;;  %v388_v24 = vld [vmem:[#allocation2 + $0x48] sm:$0xff] }
  0xcd   :  { %v59_v41 = vpop.permute.xlu1 %58 }
  0xce   :  { %v133_v43 = vsel %vm1293_vm2, %v100_v40, -1e+30  ;;  %v73_v19 = vadd.f32 %v934_v29, %v59_v41  ;;  %v268_v40 = vld [vmem:[#allocation2 + $0x30] sm:$0xff] }
  0xcf   :  { %v137_v34 = vmul.f32 1.442695, %v133_v43 }
  0xd0   :  { %v77_v45 = vmul.f32 0.01, %v73_v19 }
  0xd1   :  { %959 = vpow2.f32 %v137_v34 }
  0xd2   :  { %v81_v42 = vmax.f32 %v73_v19, %v77_v45  ;;  %v511_v19 = vld [vmem:[#allocation2 + $0x78] sm:$0xff] }
  0xd4   :  { %v101_v10 = vsub.f32 %v81_v42, %v90_v36  ;;  %v390_v42 = vld [vmem:[#allocation2 + $0x58] sm:$0xff] }
  0xd6   :  { %v134_v17 = vsel %vm1317_vm4, %v101_v10, -1e+30  ;;  %v94_v51 = vpop.permute.xlu1 %93  ;;  %v145_v10 = vld [vmem:[#allocation2] sm:$0xff] }
  0xd7   :  { %v960_v52 = vpop.eup %959  ;;  %v139_v54 = vmul.f32 1.442695, %v134_v17  ;;  %v102_v55 = vsub.f32 %v82_v49, %v94_v51 }
  0xd8   :  { %181 = vmatmul.f32.vlgmr.msra.gmra.mxu0 %v960_v52  ;;  %v146_v52 = vld [vmem:[#allocation2 + $0x8] sm:$0xff] }
  0xd9   :  { %961 = vpow2.f32 %v139_v54  ;;  %v135_v58 = vsel %vm1341_vm6, %v102_v55, -1e+30 }
  0xda   :  { %v141_v4 = vmul.f32 1.442695, %v135_v58 }
  0xdc   :  { %963 = vpow2.f32 %v141_v4 }
  0xde   :  { %v98_v59 = vpop.permute.xlu1 %97 }
  0xdf   :  { %v962_v60 = vpop.eup %961  ;;  %v103_v61 = vsub.f32 %v83_v53, %v98_v59  ;;  %v147_v53 = vld [vmem:[#allocation2 + $0x10] sm:$0xff] }
  0xe0   :  { %184 = vmatmul.f32.gmra.mxu0 %v962_v60 }
  0xe1   :  { %v136_v26 = vsel %vm1374_vm8, %v103_v61, -1e+30 }
  0xe2   :  { %v143_v62 = vmul.f32 1.442695, %v136_v26  ;;  %v964_v63 = vpop.eup %963 }
  0xe4   :  { %965 = vpow2.f32 %v143_v62 }
  0xe8   :  { %187 = vmatmul.f32.gmra.mxu0 %v964_v63 }
  0xea   :  { %v966_v0 = vpop.eup %965 }
  0xf0   :  { %190 = vmatmul.f32.gmra.mxu0 %v966_v0 }
 0x104   :  { %v304_v5 = vpop.f32.mrf.mxu1 }
 0x105   :  { %v316_v6 = vadd.f32 %v304_v5, %v266_v2  ;;  %v148_v2 = vld [vmem:[#allocation2 + $0x18] sm:$0xff] }
 0x107   :  { %320 = vst.msk [vmem:[#allocation2 + $0x20] sm:$0xff] %vm27_vm9, %v316_v6 }
 0x10d   :  { %v425_v8 = vpop.f32.mrf.mxu2 }
 0x10e   :  { %v437_v11 = vadd.f32 %v425_v8, %v387_v7  ;;  %v1436_v57 = vld [vmem:[#allocation2 + $0x20] sm:$0xff] }
 0x10f   :  { %967 = vrcp.f32 %v1436_v57 }
 0x110   :  { %441 = vst.msk [vmem:[#allocation2 + $0x40] sm:$0xff] %vm27_vm9, %v437_v11 }
 0x113   :  { %v546_v13 = vpop.f32.mrf.mxu3 }
 0x114   :  { %v558_v14 = vadd.f32 %v546_v13, %v508_v12 }
 0x115   :  { %v968_v15 = vpop.eup %967 }
 0x116   :  { %562 = vst.msk [vmem:[#allocation2 + $0x60] sm:$0xff] %vm27_vm9, %v558_v14  ;;  %v621_v16 = vmul.f32 %v968_v15, %v1436_v57 }
 0x117   :  { %v1458_v58 = vld [vmem:[#allocation2 + $0x40] sm:$0xff] }
 0x118   :  { %v625_v18 = vsub.f32 2.0, %v621_v16 }
 0x11a   :  { %v629_v20 = vmul.f32 %v968_v15, %v625_v18  ;;  %v307_v21 = vpop.f32.mrf.mxu1 }
 0x11b   :  { %v317_v22 = vadd.f32 %v307_v21, %v267_v3 }
 0x11c   :  { %v549_v48 = vpop.f32.mrf.mxu3  ;;  %635 = vperm.xlu1 %929, %v629_v20  }
 0x11d   :  { %v559_v23 = vadd.f32 %v549_v48, %v509_v9  ;;  %v1442_v25 = vld [vmem:[#allocation2 + $0x60] sm:$0xff]  ;;  %321 = vst.msk [vmem:[#allocation2 + $0x28] sm:$0xff] %vm27_vm9, %v317_v22 }
 0x11e   :  { %969 = vrcp.f32 %v1442_v25 }
 0x11f   :  { %563 = vst.msk [vmem:[#allocation2 + $0x68] sm:$0xff] %vm27_vm9, %v559_v23  ;;  %v428_v27 = vpop.f32.mrf.mxu2 }
 0x120   :  { %v438_v28 = vadd.f32 %v428_v27, %v388_v24 }
 0x122   :  { %442 = vst.msk [vmem:[#allocation2 + $0x48] sm:$0xff] %vm27_vm9, %v438_v28 }
 0x124   :  { %v970_v29 = vpop.eup %969  ;;  %v1470_v0 = vld [vmem:[#allocation2 + $0x28] sm:$0xff] }
 0x125   :  { %v709_v30 = vmul.f32 %v970_v29, %v1442_v25 }
 0x127   :  { %v713_v31 = vsub.f32 2.0, %v709_v30 }
 0x129   :  { %v717_v32 = vmul.f32 %v970_v29, %v713_v31  ;;  %v1466_v62 = vld [vmem:[#allocation2 + $0x48] sm:$0xff] }
 0x12b   :  { %723 = vperm.xlu0 %930, %v717_v32  }
 0x12e   :  { %v431_v35 = vpop.f32.mrf.mxu2 }
 0x12f   :  { %v439_v36 = vadd.f32 %v431_v35, %v389_v33 }
 0x131   :  { %443 = vst.msk [vmem:[#allocation2 + $0x50] sm:$0xff] %vm27_vm9, %v439_v36 }
 0x138   :  { %v1475_v12 = vld [vmem:[#allocation2 + $0x50] sm:$0xff] }
 0x13a   :  { %v552_v38 = vpop.f32.mrf.mxu3 }
 0x13b   :  { %v560_v39 = vadd.f32 %v552_v38, %v510_v37 }
 0x13d   :  { %564 = vst.msk [vmem:[#allocation2 + $0x70] sm:$0xff] %vm27_vm9, %v560_v39  ;;  %v310_v41 = vpop.f32.mrf.mxu1 }
 0x13e   :  { %v318_v43 = vadd.f32 %v310_v41, %v268_v40 }
 0x140   :  { %322 = vst.msk [vmem:[#allocation2 + $0x30] sm:$0xff] %vm27_vm9, %v318_v43 }
 0x142   :  { %v555_v34 = vpop.f32.mrf.mxu3 }
 0x143   :  { %v561_v45 = vadd.f32 %v555_v34, %v511_v19  ;;  %v1503_v34 = vld [vmem:[#allocation2 + $0x68] sm:$0xff] }
 0x145   :  { %v313_v46 = vpop.f32.mrf.mxu1  ;;  %565 = vst.msk [vmem:[#allocation2 + $0x78] sm:$0xff] %vm27_vm9, %v561_v45 }
 0x146   :  { %v319_v47 = vadd.f32 %v313_v46, %v269_v44 }
 0x147   :  { %v1480_v16 = vld [vmem:[#allocation2 + $0x30] sm:$0xff] }
 0x148   :  { %323 = vst.msk [vmem:[#allocation2 + $0x38] sm:$0xff] %vm27_vm9, %v319_v47  ;;  %v703_v47 = vld [vmem:[#allocation2 + $0x70] sm:$0xff] }
 0x14c   :  { %v434_v49 = vpop.f32.mrf.mxu2  ;;  %v1488_v24 = vld [vmem:[#allocation2 + $0x78] sm:$0xff] }
 0x14d   :  { %v440_v50 = vadd.f32 %v434_v49, %v390_v42 }
 0x14f   :  { %444 = vst.msk [vmem:[#allocation2 + $0x58] sm:$0xff] %vm27_vm9, %v440_v50  ;;  %v1493_v31 = vld [vmem:[#allocation2 + $0x38] sm:$0xff] }
 0x155   :  { %v182_v17 = vpop.f32.mrf.mxu0 }
 0x156   :  { %v194_v51 = vadd.f32 %v182_v17, %v145_v10  ;;  %v1496_v35 = vld [vmem:[#allocation2 + $0x58] sm:$0xff] }
 0x158   :  { %199 = vst.msk [vmem:[#allocation2] sm:$0xff] %vm27_vm9, %v194_v51 }
 0x15d   :  { %v185_v54 = vpop.f32.mrf.mxu0 }
 0x15e   :  { %v195_v55 = vadd.f32 %v185_v54, %v146_v52 }
 0x15f   :  { %v1456_v56 = vld [vmem:[#allocation2] sm:$0xff] }
 0x160   :  { %200 = vst.msk [vmem:[#allocation2 + $0x8] sm:$0xff] %vm27_vm9, %v195_v55  ;;  %971 = vrcp.f32 %v1456_v56 }
 0x161   :  { %973 = vrcp.f32 %v1458_v58 }
 0x165   :  { %v188_v4 = vpop.f32.mrf.mxu0 }
 0x166   :  { %v972_v59 = vpop.eup %971  ;;  %v196_v60 = vadd.f32 %v188_v4, %v147_v53 }
 0x167   :  { %v577_v61 = vmul.f32 %v972_v59, %v1456_v56  ;;  %v1464_v26 = vld [vmem:[#allocation2 + $0x8] sm:$0xff]  ;;  %v974_v63 = vpop.eup %973 }
 0x168   :  { %201 = vst.msk [vmem:[#allocation2 + $0x10] sm:$0xff] %vm27_vm9, %v196_v60  ;;  %975 = vrcp.f32 %v1464_v26  ;;  %v665_v6 = vmul.f32 %v974_v63, %v1458_v58 }
 0x169   :  { %v581_v1 = vsub.f32 2.0, %v577_v61  ;;  %977 = vrcp.f32 %v1466_v62 }
 0x16a   :  { %979 = vrcp.f32 %v1470_v0  ;;  %v669_v14 = vsub.f32 2.0, %v665_v6 }
 0x16b   :  { %v585_v5 = vmul.f32 %v972_v59, %v581_v1 }
 0x16c   :  { %v673_v21 = vmul.f32 %v974_v63, %v669_v14 }
 0x16d   :  { %v191_v7 = vpop.f32.mrf.mxu0  ;;  %591 = vperm.xlu2 %928, %v585_v5  }
 0x16e   :  { %v976_v8 = vpop.eup %975  ;;  %v197_v11 = vadd.f32 %v191_v7, %v148_v2 }
 0x16f   :  { %v578_v13 = vmul.f32 %v976_v8, %v1464_v26  ;;  %v1478_v15 = vld [vmem:[#allocation2 + $0x10] sm:$0xff]  ;;  %v978_v18 = vpop.eup %977 }
 0x170   :  { %202 = vst.msk [vmem:[#allocation2 + $0x18] sm:$0xff] %vm27_vm9, %v197_v11  ;;  %981 = vrcp.f32 %v1478_v15  ;;  %v980_v3 = vpop.eup %979  ;;  %v666_v22 = vmul.f32 %v978_v18, %v1466_v62 }
 0x171   :  { %v582_v9 = vsub.f32 2.0, %v578_v13  ;;  %983 = vrcp.f32 %v1475_v12  ;;  %v622_v48 = vmul.f32 %v980_v3, %v1470_v0 }
 0x172   :  { %985 = vrcp.f32 %v1480_v16  ;;  %v670_v29 = vsub.f32 2.0, %v666_v22 }
 0x173   :  { %v586_v20 = vmul.f32 %v976_v8, %v582_v9  ;;  %v626_v33 = vsub.f32 2.0, %v622_v48 }
 0x174   :  { %v674_v39 = vmul.f32 %v978_v18, %v670_v29 }
 0x175   :  { %596 = vperm.xlu0 %930, %v586_v20   ;;  %679 = vperm.xlu2 %928, %v673_v21   ;;  %v630_v41 = vmul.f32 %v980_v3, %v626_v33 }
 0x176   :  { %v982_v23 = vpop.eup %981 }
 0x177   :  { %v984_v27 = vpop.eup %983  ;;  %v579_v28 = vmul.f32 %v982_v23, %v1478_v15  ;;  %v1491_v30 = vld [vmem:[#allocation2 + $0x18] sm:$0xff] }
 0x178   :  { %v986_v32 = vpop.eup %985  ;;  %987 = vrcp.f32 %v1491_v30  ;;  %v667_v37 = vmul.f32 %v984_v27, %v1475_v12 }
 0x179   :  { %v583_v36 = vsub.f32 2.0, %v579_v28  ;;  %989 = vrcp.f32 %v1488_v24  ;;  %v623_v40 = vmul.f32 %v986_v32, %v1480_v16 }
 0x17a   :  { %991 = vrcp.f32 %v1493_v31  ;;  %v671_v19 = vsub.f32 2.0, %v667_v37 }
 0x17b   :  { %v587_v38 = vmul.f32 %v982_v23, %v583_v36  ;;  %993 = vrcp.f32 %v1496_v35  ;;  %v627_v45 = vsub.f32 2.0, %v623_v40 }
 0x17c   :  { %995 = vrcp.f32 %v1503_v34  ;;  %v675_v10 = vmul.f32 %v984_v27, %v671_v19 }
 0x17d   :  { %601 = vperm.xlu1 %929, %v587_v38   ;;  %684 = vperm.xlu0 %930, %v674_v39   ;;  %997 = vrcp.f32 %v703_v47  ;;  %v631_v17 = vmul.f32 %v986_v32, %v627_v45 }
 0x17e   :  { %v988_v43 = vpop.eup %987  ;;  %640 = vperm.xlu2 %928, %v630_v41  }
 0x17f   :  { %v990_v44 = vpop.eup %989  ;;  %v580_v46 = vmul.f32 %v988_v43, %v1491_v30 }
 0x180   :  { %v992_v42 = vpop.eup %991  ;;  %v712_v54 = vmul.f32 %v990_v44, %v1488_v24 }
 0x181   :  { %v994_v49 = vpop.eup %993  ;;  %v584_v50 = vsub.f32 2.0, %v580_v46  ;;  %v624_v52 = vmul.f32 %v992_v42, %v1493_v31 }
 0x182   :  { %v668_v55 = vmul.f32 %v994_v49, %v1496_v35  ;;  %v996_v53 = vpop.eup %995  ;;  %v716_v59 = vsub.f32 2.0, %v712_v54 }
 0x183   :  { %v588_v51 = vmul.f32 %v988_v43, %v584_v50  ;;  %v628_v4 = vsub.f32 2.0, %v624_v52  ;;  %v998_v60 = vpop.eup %997  ;;  %v710_v2 = vmul.f32 %v996_v53, %v1503_v34 }
 0x184   :  { %v672_v61 = vsub.f32 2.0, %v668_v55  ;;  %v720_v1 = vmul.f32 %v990_v44, %v716_v59  ;;  %v711_v6 = vmul.f32 %v998_v60, %v703_v47 }
 0x185   :  { %689 = vperm.xlu1 %929, %v675_v10   ;;  %645 = vperm.xlu0 %930, %v631_v17   ;;  %v632_v63 = vmul.f32 %v992_v42, %v628_v4  ;;  %v714_v7 = vsub.f32 2.0, %v710_v2 }
 0x186   :  { %606 = vperm.xlu2 %928, %v588_v51   ;;  %v676_v5 = vmul.f32 %v994_v49, %v672_v61  ;;  %v715_v8 = vsub.f32 2.0, %v711_v6 }
 0x187   :  { %v718_v11 = vmul.f32 %v996_v53, %v714_v7 }
 0x188   :  { %v719_v13 = vmul.f32 %v998_v60, %v715_v8 }
 0x18d   :  { %650 = vperm.xlu1 %929, %v632_v63   ;;  %738 = vperm.xlu0 %930, %v720_v1  }
 0x18e   :  { %694 = vperm.xlu2 %928, %v676_v5   ;;  %v636_v14 = vpop.permute.xlu1 %635 }
 0x18f   :  { %v653_v18 = vmul.f32 %v636_v14, %v1436_v57 }
 0x195   :  { %728 = vperm.xlu1 %929, %v718_v11  }
 0x196   :  { %733 = vperm.xlu2 %928, %v719_v13  }
 0x19d   :  { %v724_v3 = vpop.permute.xlu0 %723  ;;  %749 = vrot.lane.b32.xlu1 %v653_v18, %s1035_s1 }
 0x19e   :  { %v741_v9 = vmul.f32 %v724_v3, %v1442_v25 }
 0x1a0   :  { %781 = vrot.lane.b32.xlu0 %v741_v9, %s1036_s24 }
 0x1c7   :  { %v592_v20 = vpop.permute.xlu2 %591 }
 0x1cf   :  { %v680_v21 = vpop.permute.xlu2 %679 }
 0x1d0   :  { %v697_v22 = vmul.f32 %v680_v21, %v1458_v58 }
 0x1d2   :  { %765 = vrot.lane.b32.xlu2 %v697_v22, %s1037_s2 }
 0x1d8   :  { %v641_v48 = vpop.permute.xlu2 %640 }
 0x1d9   :  { %v654_v23 = vmul.f32 %v641_v48, %v1470_v0 }
 0x1db   :  { %751 = vrot.lane.b32.xlu2 %v654_v23, %s1035_s1 }
 0x1e0   :  { %v607_v57 = vpop.permute.xlu2 %606 }
 0x1e1   :  { %v612_v53 = vmul.f32 %v607_v57, %v1491_v30 }
 0x1e7   :  { %v597_v27 = vpop.permute.xlu0 %596 }
 0x1e8   :  { %v695_v28 = vpop.permute.xlu2 %694  ;;  %v610_v1 = vmul.f32 %v597_v27, %v1464_v26 }
 0x1e9   :  { %v700_v29 = vmul.f32 %v695_v28, %v1496_v35 }
 0x1eb   :  { %771 = vrot.lane.b32.xlu2 %v700_v29, %s1037_s2 }
 0x1ef   :  { %v602_v25 = vpop.permute.xlu1 %601  ;;  %v685_v32 = vpop.permute.xlu0 %684 }
 0x1f0   :  { %v698_v33 = vmul.f32 %v685_v32, %v1466_v62  ;;  %v734_v36 = vpop.permute.xlu2 %733  ;;  %v611_v50 = vmul.f32 %v602_v25, %v1478_v15 }
 0x1f1   :  { %v743_v37 = vmul.f32 %v734_v36, %v703_v47 }
 0x1f2   :  { %767 = vrot.lane.b32.xlu0 %v698_v33, %s1037_s2 }
 0x1f3   :  { %785 = vrot.lane.b32.xlu2 %v743_v37, %s1036_s24 }
 0x1f7   :  { %v690_v58 = vpop.permute.xlu1 %689  ;;  %v646_v38 = vpop.permute.xlu0 %645 }
 0x1f8   :  { %v699_v0 = vmul.f32 %v690_v58, %v1475_v12  ;;  %v655_v39 = vmul.f32 %v646_v38, %v1480_v16  ;;  %v609_v16 = vmul.f32 %v592_v20, %v1456_v56 }
 0x1fa   :  { %769 = vrot.lane.b32.xlu1 %v699_v0, %s1037_s2  ;;  %753 = vrot.lane.b32.xlu0 %v655_v39, %s1035_s1 }
 0x1ff   :  { %v651_v35 = vpop.permute.xlu1 %650  ;;  %v739_v40 = vpop.permute.xlu0 %738 }
 0x200   :  { %v656_v41 = vmul.f32 %v651_v35, %v1493_v31  ;;  %v744_v62 = vmul.f32 %v739_v40, %v1488_v24 }
 0x202   :  { %755 = vrot.lane.b32.xlu1 %v656_v41, %s1035_s1  ;;  %787 = vrot.lane.b32.xlu0 %v744_v62, %s1036_s24 }
 0x207   :  { %v729_v43 = vpop.permute.xlu1 %728 }
 0x208   :  { %v742_v19 = vmul.f32 %v729_v43, %v1503_v34 }
 0x20a   :  { %783 = vrot.lane.b32.xlu1 %v742_v19, %s1036_s24 }
 0x20f   :  { %v750_v12 = vpop.permute.xlu1 %749 }
 0x210   :  { %v794_v44 = vsel %vm793_vm10, %v609_v16, %v750_v12 }
 0x212   :  { %v782_v24 = vpop.permute.xlu0 %781 }
 0x22c   :  { %v766_v31 = vpop.permute.xlu2 %765 }
 0x22d   :  { %v799_v45 = vsel %vm798_vm11, %v794_v44, %v766_v31 }
 0x22e   :  { %v804_v46 = vsel %vm803_vm12, %v799_v45, %v782_v24 }
 0x22f   :  { %v809_v47 = vsel %vm808_vm13, %v804_v46, 0.0 }
 0x230   :  { %813 = vst [vmem:[#allocation3] sm:$0xff] %v809_v47 }
 0x235   :  { %v752_v34 = vpop.permute.xlu2 %751 }
 0x236   :  { %v795_v30 = vsel %vm793_vm10, %v610_v1, %v752_v34 }
 0x245   :  { %v772_v42 = vpop.permute.xlu2 %771 }
 0x24d   :  { %v786_v51 = vpop.permute.xlu2 %785 }
 0x264   :  { %v768_v49 = vpop.permute.xlu0 %767 }
 0x265   :  { %v800_v2 = vsel %vm798_vm11, %v795_v30, %v768_v49 }
 0x26c   :  { %v770_v56 = vpop.permute.xlu1 %769  ;;  %v754_v10 = vpop.permute.xlu0 %753 }
 0x26d   :  { %v796_v17 = vsel %vm793_vm10, %v611_v50, %v754_v10 }
 0x26e   :  { %v801_v52 = vsel %vm798_vm11, %v796_v17, %v770_v56 }
 0x26f   :  { %v806_v54 = vsel %vm803_vm12, %v801_v52, %v786_v51 }
 0x270   :  { %v811_v55 = vsel %vm808_vm13, %v806_v54, 0.0 }
 0x271   :  { %815 = vst [vmem:[#allocation3 + $0x10] sm:$0xff] %v811_v55 }
 0x274   :  { %v756_v4 = vpop.permute.xlu1 %755  ;;  %v788_v60 = vpop.permute.xlu0 %787 }
 0x275   :  { %v797_v59 = vsel %vm793_vm10, %v612_v53, %v756_v4 }
 0x276   :  { %v802_v15 = vsel %vm798_vm11, %v797_v59, %v772_v42 }
 0x277   :  { %v807_v61 = vsel %vm803_vm12, %v802_v15, %v788_v60 }
 0x278   :  { %v812_v63 = vsel %vm808_vm13, %v807_v61, 0.0 }
 0x279   :  { %816 = vst [vmem:[#allocation3 + $0x18] sm:$0xff] %v812_v63 }
 0x27c   :  { %v784_v5 = vpop.permute.xlu1 %783 }
 0x27d   :  { %v805_v6 = vsel %vm803_vm12, %v800_v2, %v784_v5 }
 0x27e   :  { %v810_v7 = vsel %vm808_vm13, %v805_v6, 0.0 }
 0x27f   :  { %814 = vst [vmem:[#allocation3 + $0x8] sm:$0xff] %v810_v7 }
 0x280   :  { %829 = dma.vmem_to_hbm [thread:$0]  %s822_s26, 512, %s824_s3, [#allocation4], %s1039_s29, %s1039_s29, %s1040_s30  }
 0x281   :  { %1023 = dma.done.wait [#allocation4], 512  }
 0x282   :  { %1024 = vsyncadd [#allocation4], 4294966784 }
 0x283   :  { %834 = vsyncpa [#allocation4], 1 }

</bundles_post_ra>
